<compile_context>
chip_gen: v7x
topology: tpu7x:2x2x1
jax: 0.10.0
libtpu: 0.0.40
codegen_flags: <defaults>
</compile_context>

<pallas_src>
import math

import numpy as np
import jax
import jax.numpy as jnp
from jax.experimental import pallas as pl
from jax.experimental.pallas import tpu as pltpu

# ---- Config (from get_config() in the PyTorch source) -----------------------
H = 128          # LSTM hidden size
K = 100          # fc1 output size
A_F_num = 500    # appearance feature dim
TIME_STEP = 6    # g_config.timeStep

A_F_PAD = 512    # lane-aligned pad of the appearance feature dim (500 -> 512)
K_PAD = 128      # lane-dense pad of fc1/relu width (100 -> 128)


def _round_up(x, m):
    return (x + m - 1) // m * m


# ---- Pallas kernel -----------------------------------------------------------
def appearance_lstm_kernel(
    track_ref,                              # (T, TB, A_F_PAD) bf16, time-major batch tile
    target_ref,                             # (TB, A_F_PAD)    bf16
    w_tgt_ref, b_tgt_ref,                   # (A_F_PAD, H) bf16, (1, H) f32
    w_ih_ref, b_gates_ref, w_hh_ref,        # (A_F_PAD, 4H) bf16, (1, 4H) f32, (H, 4H) bf16
    w_fc1_h_ref, w_fc1_t_ref, b_fc1_ref,    # (H, K_PAD) bf16 x2, (1, K_PAD) f32
    relu_ref,                               # (T, TB, K_PAD) bf16 output (lane-dense)
    pre_ref,                                # VMEM scratch (T, TB, 4H) f32
    h_all_ref,                              # VMEM scratch (T, TB, H)  bf16
):
    T, TB, A_F = track_ref.shape
    Hh = w_hh_ref.shape[0]

    # (1) Input projection for ALL timesteps in one batched MXU matmul
    #     (hoisted out of the serial recurrence); both LSTM biases folded in once.
    x2d = track_ref[...].reshape(T * TB, A_F)
    pre = jnp.dot(x2d, w_ih_ref[...], preferred_element_type=jnp.float32) + b_gates_ref[...]
    pre_ref[...] = pre.reshape(T, TB, 4 * Hh)

    # (2) target branch (target_fc), once per batch tile.
    target_out = (
        jnp.dot(target_ref[...], w_tgt_ref[...], preferred_element_type=jnp.float32)
        + b_tgt_ref[...]
    )  # (TB, H) f32

    # (3) Serial LSTM recurrence: only the small (TB,H)@(H,4H) matmul + gate math stay
    #     in the unrolled loop.  The hh contribution is accumulated back into the VMEM
    #     pre-activation scratch and each 128-wide gate slice is read back from VMEM,
    #     so no (TB, 4H) f32 value has to stay live in vregs.
    c = jnp.zeros((TB, Hh), jnp.float32)
    h_bf = None
    for t in range(T):
        if t > 0:   # h0 == 0 -> hh matmul is exactly zero at t == 0
            pre_ref[t] = pre_ref[t] + jnp.dot(
                h_bf, w_hh_ref[...], preferred_element_type=jnp.float32)
        # PyTorch gate ordering: input, forget, cell(g), output
        i_g = jax.nn.sigmoid(pre_ref[t, :, 0 * Hh:1 * Hh])
        f_g = jax.nn.sigmoid(pre_ref[t, :, 1 * Hh:2 * Hh])
        g_g = jnp.tanh(pre_ref[t, :, 2 * Hh:3 * Hh])
        o_g = jax.nn.sigmoid(pre_ref[t, :, 3 * Hh:4 * Hh])
        c = f_g * c + i_g * g_g
        h_bf = (o_g * jnp.tanh(c)).astype(jnp.bfloat16)
        h_all_ref[t] = h_bf

    # (4) fc1 + relu hoisted out of the loop and batched over all timesteps.
    #     cat(h, target_out) @ w_fc1 == h @ w_fc1[:H] + target_out @ w_fc1[H:]
    kp = w_fc1_h_ref.shape[1]
    t_fc1 = (
        jnp.dot(target_out.astype(jnp.bfloat16), w_fc1_t_ref[...],
                preferred_element_type=jnp.float32)
        + b_fc1_ref[...]
    )                                                       # (TB, K_PAD), once per tile
    h_all = h_all_ref[...].reshape(T * TB, Hh)              # bf16 already
    fc1 = jnp.dot(h_all, w_fc1_h_ref[...],
                  preferred_element_type=jnp.float32).reshape(T, TB, kp)
    relu = jnp.maximum(fc1 + t_fc1[None, :, :], 0.0)        # (T, TB, K_PAD) f32
    relu_ref[...] = relu.astype(relu_ref.dtype)             # bf16 lane-dense full-slab store


# ---- Parameter prep: bf16 matmul weights, combined / padded biases -----------
def _prep_params(params):
    bf16, f32 = jnp.bfloat16, jnp.float32
    fpad = A_F_PAD - params["w_ih"].shape[0]   # 12 zero rows (match zero-padded input cols)
    kdim = params["w_fc1"].shape[1]            # 100
    w_tgt = jnp.pad(params["w_tgt"], ((0, fpad), (0, 0))).astype(bf16)
    b_tgt = params["b_tgt"].astype(f32)
    w_ih = jnp.pad(params["w_ih"], ((0, fpad), (0, 0))).astype(bf16)
    w_hh = params["w_hh"].astype(bf16)
    b_gates = (params["b_ih"] + params["b_hh"]).astype(f32)
    w_fc1 = params["w_fc1"]
    w_fc1_h = jnp.pad(w_fc1[:H], ((0, 0), (0, K_PAD - kdim))).astype(bf16)
    w_fc1_t = jnp.pad(w_fc1[H:], ((0, 0), (0, K_PAD - kdim))).astype(bf16)
    b_fc1 = jnp.pad(params["b_fc1"], ((0, 0), (0, K_PAD - kdim))).astype(f32)
    return (w_tgt, b_tgt, w_ih, b_gates, w_hh, w_fc1_h, w_fc1_t, b_fc1)


# ---- Wrapper ----------------------------------------------------------------
def appearance_lstm(track_input, target_input, params, *, tile_b=256, interpret=False):
    B, T, A_F = track_input.shape
    assert T == TIME_STEP and A_F == A_F_num

    # Tile sizing: multiple of 8 sublanes; default 256 fills the 256-wide MXU on v6e/v7x
    # and halves grid-step overhead vs 128.  Once the batch allows a >=128-row tile per
    # core, cap tile_b so there are at least 2 grid tiles (megacore sharding on v7x).
    tile_b = _round_up(max(8, int(tile_b)), 8)
    b8 = _round_up(B, 8)
    if b8 >= 2 * 128:
        tile_b = min(tile_b, _round_up(-(-b8 // 2), 8))
    tile_b = min(tile_b, b8)
    B_pad = _round_up(B, tile_b)
    n_tiles = B_pad // tile_b

    if B_pad != B:
        track_input = jnp.pad(track_input, ((0, B_pad - B), (0, 0), (0, 0)))
        target_input = jnp.pad(target_input, ((0, B_pad - B), (0, 0)))

    # Layout plumbing: time-major bf16, feature dim zero-padded 500 -> 512 so every DMA
    # and matmul contraction is lane-dense / 128-aligned (exact: padded weight rows are 0).
    # TODO(synk): if the producer can hand over time-major bf16 (T,B,512) directly, this
    # XLA transpose/cast/pad pass over the track tensor disappears entirely.
    fpad = A_F_PAD - A_F
    track_tm = jnp.pad(jnp.transpose(track_input, (1, 0, 2)).astype(jnp.bfloat16),
                       ((0, 0), (0, 0), (0, fpad)))          # (T, B_pad, A_F_PAD)
    target_b = jnp.pad(target_input.astype(jnp.bfloat16),
                       ((0, 0), (0, fpad)))                   # (B_pad, A_F_PAD)

    (w_tgt, b_tgt, w_ih, b_gates, w_hh, w_fc1_h, w_fc1_t, b_fc1) = _prep_params(params)

    def _resident(a):           # whole array resident in VMEM, constant index map
        nd = a.ndim
        return pl.BlockSpec(a.shape, lambda i, _n=nd: (0,) * _n)

    track_imap = lambda i: (0, i, 0)
    if n_tiles >= 3:
        # Deeper pipelining only on the one truly streamed input (hides DMA jitter).
        track_spec = pl.BlockSpec((T, tile_b, A_F_PAD), track_imap,
                                  pipeline_mode=pl.Buffered(3))
    else:
        track_spec = pl.BlockSpec((T, tile_b, A_F_PAD), track_imap)

    grid_spec = pltpu.PrefetchScalarGridSpec(
        num_scalar_prefetch=0,
        grid=(n_tiles,),
        in_specs=[
            track_spec,
            pl.BlockSpec((tile_b, A_F_PAD), lambda i: (i, 0)),
            _resident(w_tgt), _resident(b_tgt),
            _resident(w_ih), _resident(b_gates), _resident(w_hh),
            _resident(w_fc1_h), _resident(w_fc1_t), _resident(b_fc1),
        ],
        out_specs=pl.BlockSpec((T, tile_b, K_PAD), lambda i: (0, i, 0)),
        scratch_shapes=[
            pltpu.VMEM((T, tile_b, 4 * H), jnp.float32),    # pre-computed gates
            pltpu.VMEM((T, tile_b, H), jnp.bfloat16),       # all hidden states (bf16)
        ],
    )

    relu_pad = pl.pallas_call(
        appearance_lstm_kernel,
        out_shape=jax.ShapeDtypeStruct((T, B_pad, K_PAD), jnp.bfloat16),
        grid_spec=grid_spec,
        compiler_params=pltpu.CompilerParams(
            dimension_semantics=("parallel",),
            # Explicit scoped-VMEM budget so tile_b=256 works on v5e (16 MiB default)
            # while staying well under v7x's 64 MiB physical VMEM.
            vmem_limit_bytes=32 * 1024 * 1024,
        ),
        interpret=interpret,
    )(track_tm, target_b, w_tgt, b_tgt, w_ih, b_gates, w_hh,
      w_fc1_h, w_fc1_t, b_fc1)

    # Epilogue: slice BEFORE transposing (pad bytes never make the XLA round trip).
    relu_sl = relu_pad[:, :B, :K]                            # (T, B, K) bf16
    # fc2 is a tiny (K,2) matmul on already-sliced data -> cheaper in XLA than writing a
    # 64x over-padded outs slab from the kernel (per perf review).
    outs_tm = jnp.dot(relu_sl, params["w_fc2"].astype(jnp.bfloat16),
                      preferred_element_type=jnp.float32) + params["b_fc2"]
    outs = jnp.transpose(outs_tm, (1, 0, 2))                 # (B, T, 2) f32
    relu_outs = jnp.transpose(relu_sl, (1, 0, 2)).astype(jnp.float32)   # (B, T, K) f32
    return outs, relu_outs


# ---- Pure-JAX reference (mirrors the kernel's bf16 matmul operand casts) ----
def reference(track, target, params):
    bf16, f32 = jnp.bfloat16, jnp.float32
    B, T, A_F = track.shape
    track_b = track.astype(bf16)
    target_b = target.astype(bf16)

    target_out = jnp.dot(target_b, params["w_tgt"].astype(bf16),
                         preferred_element_type=f32) + params["b_tgt"]
    b_gates = params["b_ih"] + params["b_hh"]
    pre = jnp.dot(track_b.reshape(B * T, A_F), params["w_ih"].astype(bf16),
                  preferred_element_type=f32).reshape(B, T, 4 * H) + b_gates

    h = jnp.zeros((B, H), f32)
    c = jnp.zeros((B, H), f32)
    hs = []
    w_hh = params["w_hh"].astype(bf16)
    for t in range(T):
        gates = pre[:, t, :] + jnp.dot(h.astype(bf16), w_hh, preferred_element_type=f32)
        i_g = jax.nn.sigmoid(gates[:, 0 * H:1 * H])
        f_g = jax.nn.sigmoid(gates[:, 1 * H:2 * H])
        g_g = jnp.tanh(gates[:, 2 * H:3 * H])
        o_g = jax.nn.sigmoid(gates[:, 3 * H:4 * H])
        c = f_g * c + i_g * g_g
        h = o_g * jnp.tanh(c)
        hs.append(h)

    w_fc1_h = params["w_fc1"][:H].astype(bf16)
    w_fc1_t = params["w_fc1"][H:].astype(bf16)
    w_fc2 = params["w_fc2"].astype(bf16)
    t_fc1 = jnp.dot(target_out.astype(bf16), w_fc1_t,
                    preferred_element_type=f32) + params["b_fc1"]
    outs, relus = [], []
    for t in range(T):
        fc1 = jnp.dot(hs[t].astype(bf16), w_fc1_h, preferred_element_type=f32) + t_fc1
        relu = jnp.maximum(fc1, 0.0)
        relus.append(relu)
        outs.append(jnp.dot(relu.astype(bf16), w_fc2,
                            preferred_element_type=f32) + params["b_fc2"])
    return jnp.stack(outs, axis=1), jnp.stack(relus, axis=1)


# ---- Deterministic parameter init (PyTorch-style U(-1/sqrt(fan_in), ...)) ----
def init_params(key):
    ks = jax.random.split(key, 10)

    def unif(k, shape, bound):
        return jax.random.uniform(k, shape, jnp.float32, -bound, bound)

    b_lin = 1.0 / math.sqrt(A_F_num)
    b_lstm = 1.0 / math.sqrt(H)
    b_fc1 = 1.0 / math.sqrt(2 * H)
    b_fc2 = 1.0 / math.sqrt(K)
    return dict(
        w_tgt=unif(ks[0], (A_F_num, H), b_lin),
        b_tgt=unif(ks[1], (1, H), b_lin),
        w_ih=unif(ks[2], (A_F_num, 4 * H), b_lstm),
        b_ih=unif(ks[3], (1, 4 * H), b_lstm),
        w_hh=unif(ks[4], (H, 4 * H), b_lstm),
        b_hh=unif(ks[5], (1, 4 * H), b_lstm),
        w_fc1=unif(ks[6], (2 * H, K), b_fc1),
        b_fc1=unif(ks[7], (1, K), b_fc1),
        w_fc2=unif(ks[8], (K, 2), b_fc2),
        b_fc2=unif(ks[9], (1, 2), b_fc2),
    )


if __name__ == "__main__":
    key = jax.random.PRNGKey(0)
    k_track, k_target, k_params = jax.random.split(key, 3)

    B = 2
    track_input = jax.random.normal(k_track, (B, TIME_STEP, A_F_num), jnp.float32)
    target_input = jax.random.normal(k_target, (B, A_F_num), jnp.float32)
    params = init_params(k_params)

    outs, relu_outs = appearance_lstm(track_input, target_input, params)
    jax.block_until_ready((outs, relu_outs))

    assert outs.shape == (B, TIME_STEP, 2)
    assert relu_outs.shape == (B, TIME_STEP, K)

    ref_outs, ref_relus = reference(track_input, target_input, params)
    np.testing.assert_allclose(np.asarray(outs), np.asarray(ref_outs),
                               atol=1e-2, rtol=1e-2)
    np.testing.assert_allclose(np.asarray(relu_outs), np.asarray(ref_relus),
                               atol=1e-2, rtol=1e-2)

    print("KERNEL_OK")
</pallas_src>

<mosaic_0001>
module attributes {stable_mosaic.version = 11 : i64} {
  func.func @appearance_lstm_kernel(%arg0: i32, %arg1: memref<6x8x512xbf16, #tpu.memory_space<vmem>>, %arg2: memref<8x512xbf16, #tpu.memory_space<vmem>>, %arg3: memref<512x128xbf16, #tpu.memory_space<vmem>>, %arg4: memref<1x128xf32, #tpu.memory_space<vmem>>, %arg5: memref<512x512xbf16, #tpu.memory_space<vmem>>, %arg6: memref<1x512xf32, #tpu.memory_space<vmem>>, %arg7: memref<128x512xbf16, #tpu.memory_space<vmem>>, %arg8: memref<128x128xbf16, #tpu.memory_space<vmem>>, %arg9: memref<128x128xbf16, #tpu.memory_space<vmem>>, %arg10: memref<1x128xf32, #tpu.memory_space<vmem>>, %arg11: memref<6x8x128xbf16, #tpu.memory_space<vmem>>, %arg12: memref<6x8x512xf32, #tpu.memory_space<vmem>>, %arg13: memref<6x8x128xbf16, #tpu.memory_space<vmem>>) attributes {dimension_semantics = [#tpu.dimension_semantics<parallel>], iteration_bounds = array<i64: 1>, scalar_prefetch = 0 : i64, scratch_operands = 2 : i64, tpu.core_type = #tpu.core_type<tc>, window_params = [{transform_indices = @transform_0, window_bounds = array<i64: 6, 8, 512>}, {transform_indices = @transform_1, window_bounds = array<i64: 8, 512>}, {pipeline_mode = #tpu.pipeline_mode<synchronous>, transform_indices = @transform_2, window_bounds = array<i64: 512, 128>}, {pipeline_mode = #tpu.pipeline_mode<synchronous>, transform_indices = @transform_3, window_bounds = array<i64: 1, 128>}, {pipeline_mode = #tpu.pipeline_mode<synchronous>, transform_indices = @transform_4, window_bounds = array<i64: 512, 512>}, {pipeline_mode = #tpu.pipeline_mode<synchronous>, transform_indices = @transform_5, window_bounds = array<i64: 1, 512>}, {pipeline_mode = #tpu.pipeline_mode<synchronous>, transform_indices = @transform_6, window_bounds = array<i64: 128, 512>}, {pipeline_mode = #tpu.pipeline_mode<synchronous>, transform_indices = @transform_7, window_bounds = array<i64: 128, 128>}, {pipeline_mode = #tpu.pipeline_mode<synchronous>, transform_indices = @transform_8, window_bounds = array<i64: 128, 128>}, {pipeline_mode = #tpu.pipeline_mode<synchronous>, transform_indices = @transform_9, window_bounds = array<i64: 1, 128>}, {transform_indices = @transform_10, window_bounds = array<i64: 6, 8, 128>}]} {
    %c0 = arith.constant 0 : index
    %c0_0 = arith.constant 0 : index
    %c0_1 = arith.constant 0 : index
    %0 = vector.load %arg1[%c0, %c0_0, %c0_1] : memref<6x8x512xbf16, #tpu.memory_space<vmem>>, vector<6x8x512xbf16>
    %1 = vector.shape_cast %0 : vector<6x8x512xbf16> to vector<48x512xbf16>
    %c0_2 = arith.constant 0 : index
    %c0_3 = arith.constant 0 : index
    %2 = vector.load %arg5[%c0_2, %c0_3] : memref<512x512xbf16, #tpu.memory_space<vmem>>, vector<512x512xbf16>
    %cst = arith.constant dense<0.000000e+00> : vector<48x512xf32>
    %3 = tpu.matmul %1, %2, %cst {dimension_numbers = #tpu.dot_dimension_numbers<[1], [0], [0], [1], [0, 0, 1, 1], [], []>} : vector<48x512xbf16>, vector<512x512xbf16>, vector<48x512xf32> -> vector<48x512xf32>
    %c0_4 = arith.constant 0 : index
    %c0_5 = arith.constant 0 : index
    %4 = vector.load %arg6[%c0_4, %c0_5] : memref<1x512xf32, #tpu.memory_space<vmem>>, vector<1x512xf32>
    %5 = vector.broadcast %4 : vector<1x512xf32> to vector<48x512xf32>
    %6 = arith.addf %3, %5 : vector<48x512xf32>
    %7 = vector.shape_cast %6 : vector<48x512xf32> to vector<6x8x512xf32>
    %c0_6 = arith.constant 0 : index
    %c0_7 = arith.constant 0 : index
    %c0_8 = arith.constant 0 : index
    %8 = vector.load %arg12[%c0_6, %c0_7, %c0_8] : memref<6x8x512xf32, #tpu.memory_space<vmem>>, vector<6x8x512xf32>
    tpu.vector_store %arg12[%c0_6, %c0_7, %c0_8], %7 {strides = array<i32>} : memref<6x8x512xf32, #tpu.memory_space<vmem>>, vector<6x8x512xf32>,
    %c0_9 = arith.constant 0 : index
    %c0_10 = arith.constant 0 : index
    %9 = vector.load %arg2[%c0_9, %c0_10] : memref<8x512xbf16, #tpu.memory_space<vmem>>, vector<8x512xbf16>
    %c0_11 = arith.constant 0 : index
    %c0_12 = arith.constant 0 : index
    %10 = vector.load %arg3[%c0_11, %c0_12] : memref<512x128xbf16, #tpu.memory_space<vmem>>, vector<512x128xbf16>
    %cst_13 = arith.constant dense<0.000000e+00> : vector<8x128xf32>
    %11 = tpu.matmul %9, %10, %cst_13 {dimension_numbers = #tpu.dot_dimension_numbers<[1], [0], [0], [1], [0, 0, 1, 1], [], []>} : vector<8x512xbf16>, vector<512x128xbf16>, vector<8x128xf32> -> vector<8x128xf32>
    %c0_14 = arith.constant 0 : index
    %c0_15 = arith.constant 0 : index
    %12 = vector.load %arg4[%c0_14, %c0_15] : memref<1x128xf32, #tpu.memory_space<vmem>>, vector<1x128xf32>
    %13 = vector.broadcast %12 : vector<1x128xf32> to vector<8x128xf32>
    %14 = arith.addf %11, %13 : vector<8x128xf32>
    %cst_16 = arith.constant 0.000000e+00 : f32
    %15 = vector.broadcast %cst_16 : f32 to vector<8x128xf32>
    %c0_17 = arith.constant 0 : index
    %c0_18 = arith.constant 0 : index
    %c0_19 = arith.constant 0 : index
    %16 = vector.load %arg12[%c0_17, %c0_18, %c0_19] : memref<6x8x512xf32, #tpu.memory_space<vmem>>, vector<1x8x128xf32>
    %17 = vector.shape_cast %16 : vector<1x8x128xf32> to vector<8x128xf32>
    %18 = arith.negf %17 : vector<8x128xf32>
    %19 = math.exp %18 : vector<8x128xf32>
    %cst_20 = arith.constant 1.000000e+00 : f32
    %20 = vector.broadcast %cst_20 : f32 to vector<8x128xf32>
    %21 = arith.addf %20, %19 : vector<8x128xf32>
    %22 = arith.divf %20, %21 : vector<8x128xf32>
    %c0_21 = arith.constant 0 : index
    %c0_22 = arith.constant 0 : index
    %c128 = arith.constant 128 : index
    %23 = vector.load %arg12[%c0_21, %c0_22, %c128] : memref<6x8x512xf32, #tpu.memory_space<vmem>>, vector<1x8x128xf32>
    %24 = vector.shape_cast %23 : vector<1x8x128xf32> to vector<8x128xf32>
    %25 = arith.negf %24 : vector<8x128xf32>
    %26 = math.exp %25 : vector<8x128xf32>
    %cst_23 = arith.constant 1.000000e+00 : f32
    %27 = vector.broadcast %cst_23 : f32 to vector<8x128xf32>
    %28 = arith.addf %27, %26 : vector<8x128xf32>
    %29 = arith.divf %27, %28 : vector<8x128xf32>
    %c0_24 = arith.constant 0 : index
    %c0_25 = arith.constant 0 : index
    %c256 = arith.constant 256 : index
    %30 = vector.load %arg12[%c0_24, %c0_25, %c256] : memref<6x8x512xf32, #tpu.memory_space<vmem>>, vector<1x8x128xf32>
    %31 = vector.shape_cast %30 : vector<1x8x128xf32> to vector<8x128xf32>
    %32 = math.tanh %31 : vector<8x128xf32>
    %c0_26 = arith.constant 0 : index
    %c0_27 = arith.constant 0 : index
    %c384 = arith.constant 384 : index
    %33 = vector.load %arg12[%c0_26, %c0_27, %c384] : memref<6x8x512xf32, #tpu.memory_space<vmem>>, vector<1x8x128xf32>
    %34 = vector.shape_cast %33 : vector<1x8x128xf32> to vector<8x128xf32>
    %35 = arith.negf %34 : vector<8x128xf32>
    %36 = math.exp %35 : vector<8x128xf32>
    %cst_28 = arith.constant 1.000000e+00 : f32
    %37 = vector.broadcast %cst_28 : f32 to vector<8x128xf32>
    %38 = arith.addf %37, %36 : vector<8x128xf32>
    %39 = arith.divf %37, %38 : vector<8x128xf32>
    %40 = arith.mulf %29, %15 : vector<8x128xf32>
    %41 = arith.mulf %22, %32 : vector<8x128xf32>
    %42 = arith.addf %40, %41 : vector<8x128xf32>
    %43 = math.tanh %42 : vector<8x128xf32>
    %44 = arith.mulf %39, %43 : vector<8x128xf32>
    %45 = arith.truncf %44 : vector<8x128xf32> to vector<8x128xbf16>
    %c0_29 = arith.constant 0 : index
    %c0_30 = arith.constant 0 : index
    %c0_31 = arith.constant 0 : index
    %46 = vector.load %arg13[%c0_29, %c0_30, %c0_31] : memref<6x8x128xbf16, #tpu.memory_space<vmem>>, vector<1x8x128xbf16>
    %47 = vector.shape_cast %46 : vector<1x8x128xbf16> to vector<8x128xbf16>
    %48 = vector.shape_cast %45 : vector<8x128xbf16> to vector<1x8x128xbf16>
    tpu.vector_store %arg13[%c0_29, %c0_30, %c0_31], %48 {strides = array<i32>} : memref<6x8x128xbf16, #tpu.memory_space<vmem>>, vector<1x8x128xbf16>,
    %c1 = arith.constant 1 : index
    %c0_32 = arith.constant 0 : index
    %c0_33 = arith.constant 0 : index
    %49 = vector.load %arg12[%c1, %c0_32, %c0_33] : memref<6x8x512xf32, #tpu.memory_space<vmem>>, vector<1x8x512xf32>
    %50 = vector.shape_cast %49 : vector<1x8x512xf32> to vector<8x512xf32>
    %c0_34 = arith.constant 0 : index
    %c0_35 = arith.constant 0 : index
    %51 = vector.load %arg7[%c0_34, %c0_35] : memref<128x512xbf16, #tpu.memory_space<vmem>>, vector<128x512xbf16>
    %cst_36 = arith.constant dense<0.000000e+00> : vector<8x512xf32>
    %52 = tpu.matmul %45, %51, %cst_36 {dimension_numbers = #tpu.dot_dimension_numbers<[1], [0], [0], [1], [0, 0, 1, 1], [], []>} : vector<8x128xbf16>, vector<128x512xbf16>, vector<8x512xf32> -> vector<8x512xf32>
    %53 = arith.addf %50, %52 : vector<8x512xf32>
    %c1_37 = arith.constant 1 : index
    %c0_38 = arith.constant 0 : index
    %c0_39 = arith.constant 0 : index
    %54 = vector.load %arg12[%c1_37, %c0_38, %c0_39] : memref<6x8x512xf32, #tpu.memory_space<vmem>>, vector<1x8x512xf32>
    %55 = vector.shape_cast %54 : vector<1x8x512xf32> to vector<8x512xf32>
    %56 = vector.shape_cast %53 : vector<8x512xf32> to vector<1x8x512xf32>
    tpu.vector_store %arg12[%c1_37, %c0_38, %c0_39], %56 {strides = array<i32>} : memref<6x8x512xf32, #tpu.memory_space<vmem>>, vector<1x8x512xf32>,
    %c1_40 = arith.constant 1 : index
    %c0_41 = arith.constant 0 : index
    %c0_42 = arith.constant 0 : index
    %57 = vector.load %arg12[%c1_40, %c0_41, %c0_42] : memref<6x8x512xf32, #tpu.memory_space<vmem>>, vector<1x8x128xf32>
    %58 = vector.shape_cast %57 : vector<1x8x128xf32> to vector<8x128xf32>
    %59 = arith.negf %58 : vector<8x128xf32>
    %60 = math.exp %59 : vector<8x128xf32>
    %cst_43 = arith.constant 1.000000e+00 : f32
    %61 = vector.broadcast %cst_43 : f32 to vector<8x128xf32>
    %62 = arith.addf %61, %60 : vector<8x128xf32>
    %63 = arith.divf %61, %62 : vector<8x128xf32>
    %c1_44 = arith.constant 1 : index
    %c0_45 = arith.constant 0 : index
    %c128_46 = arith.constant 128 : index
    %64 = vector.load %arg12[%c1_44, %c0_45, %c128_46] : memref<6x8x512xf32, #tpu.memory_space<vmem>>, vector<1x8x128xf32>
    %65 = vector.shape_cast %64 : vector<1x8x128xf32> to vector<8x128xf32>
    %66 = arith.negf %65 : vector<8x128xf32>
    %67 = math.exp %66 : vector<8x128xf32>
    %cst_47 = arith.constant 1.000000e+00 : f32
    %68 = vector.broadcast %cst_47 : f32 to vector<8x128xf32>
    %69 = arith.addf %68, %67 : vector<8x128xf32>
    %70 = arith.divf %68, %69 : vector<8x128xf32>
    %c1_48 = arith.constant 1 : index
    %c0_49 = arith.constant 0 : index
    %c256_50 = arith.constant 256 : index
    %71 = vector.load %arg12[%c1_48, %c0_49, %c256_50] : memref<6x8x512xf32, #tpu.memory_space<vmem>>, vector<1x8x128xf32>
    %72 = vector.shape_cast %71 : vector<1x8x128xf32> to vector<8x128xf32>
    %73 = math.tanh %72 : vector<8x128xf32>
    %c1_51 = arith.constant 1 : index
    %c0_52 = arith.constant 0 : index
    %c384_53 = arith.constant 384 : index
    %74 = vector.load %arg12[%c1_51, %c0_52, %c384_53] : memref<6x8x512xf32, #tpu.memory_space<vmem>>, vector<1x8x128xf32>
    %75 = vector.shape_cast %74 : vector<1x8x128xf32> to vector<8x128xf32>
    %76 = arith.negf %75 : vector<8x128xf32>
    %77 = math.exp %76 : vector<8x128xf32>
    %cst_54 = arith.constant 1.000000e+00 : f32
    %78 = vector.broadcast %cst_54 : f32 to vector<8x128xf32>
    %79 = arith.addf %78, %77 : vector<8x128xf32>
    %80 = arith.divf %78, %79 : vector<8x128xf32>
    %81 = arith.mulf %70, %42 : vector<8x128xf32>
    %82 = arith.mulf %63, %73 : vector<8x128xf32>
    %83 = arith.addf %81, %82 : vector<8x128xf32>
    %84 = math.tanh %83 : vector<8x128xf32>
    %85 = arith.mulf %80, %84 : vector<8x128xf32>
    %86 = arith.truncf %85 : vector<8x128xf32> to vector<8x128xbf16>
    %c1_55 = arith.constant 1 : index
    %c0_56 = arith.constant 0 : index
    %c0_57 = arith.constant 0 : index
    %87 = vector.load %arg13[%c1_55, %c0_56, %c0_57] : memref<6x8x128xbf16, #tpu.memory_space<vmem>>, vector<1x8x128xbf16>
    %88 = vector.shape_cast %87 : vector<1x8x128xbf16> to vector<8x128xbf16>
    %89 = vector.shape_cast %86 : vector<8x128xbf16> to vector<1x8x128xbf16>
    tpu.vector_store %arg13[%c1_55, %c0_56, %c0_57], %89 {strides = array<i32>} : memref<6x8x128xbf16, #tpu.memory_space<vmem>>, vector<1x8x128xbf16>,
    %c2 = arith.constant 2 : index
    %c0_58 = arith.constant 0 : index
    %c0_59 = arith.constant 0 : index
    %90 = vector.load %arg12[%c2, %c0_58, %c0_59] : memref<6x8x512xf32, #tpu.memory_space<vmem>>, vector<1x8x512xf32>
    %91 = vector.shape_cast %90 : vector<1x8x512xf32> to vector<8x512xf32>
    %c0_60 = arith.constant 0 : index
    %c0_61 = arith.constant 0 : index
    %92 = vector.load %arg7[%c0_60, %c0_61] : memref<128x512xbf16, #tpu.memory_space<vmem>>, vector<128x512xbf16>
    %cst_62 = arith.constant dense<0.000000e+00> : vector<8x512xf32>
    %93 = tpu.matmul %86, %92, %cst_62 {dimension_numbers = #tpu.dot_dimension_numbers<[1], [0], [0], [1], [0, 0, 1, 1], [], []>} : vector<8x128xbf16>, vector<128x512xbf16>, vector<8x512xf32> -> vector<8x512xf32>
    %94 = arith.addf %91, %93 : vector<8x512xf32>
    %c2_63 = arith.constant 2 : index
    %c0_64 = arith.constant 0 : index
    %c0_65 = arith.constant 0 : index
    %95 = vector.load %arg12[%c2_63, %c0_64, %c0_65] : memref<6x8x512xf32, #tpu.memory_space<vmem>>, vector<1x8x512xf32>
    %96 = vector.shape_cast %95 : vector<1x8x512xf32> to vector<8x512xf32>
    %97 = vector.shape_cast %94 : vector<8x512xf32> to vector<1x8x512xf32>
    tpu.vector_store %arg12[%c2_63, %c0_64, %c0_65], %97 {strides = array<i32>} : memref<6x8x512xf32, #tpu.memory_space<vmem>>, vector<1x8x512xf32>,
    %c2_66 = arith.constant 2 : index
    %c0_67 = arith.constant 0 : index
    %c0_68 = arith.constant 0 : index
    %98 = vector.load %arg12[%c2_66, %c0_67, %c0_68] : memref<6x8x512xf32, #tpu.memory_space<vmem>>, vector<1x8x128xf32>
    %99 = vector.shape_cast %98 : vector<1x8x128xf32> to vector<8x128xf32>
    %100 = arith.negf %99 : vector<8x128xf32>
    %101 = math.exp %100 : vector<8x128xf32>
    %cst_69 = arith.constant 1.000000e+00 : f32
    %102 = vector.broadcast %cst_69 : f32 to vector<8x128xf32>
    %103 = arith.addf %102, %101 : vector<8x128xf32>
    %104 = arith.divf %102, %103 : vector<8x128xf32>
    %c2_70 = arith.constant 2 : index
    %c0_71 = arith.constant 0 : index
    %c128_72 = arith.constant 128 : index
    %105 = vector.load %arg12[%c2_70, %c0_71, %c128_72] : memref<6x8x512xf32, #tpu.memory_space<vmem>>, vector<1x8x128xf32>
    %106 = vector.shape_cast %105 : vector<1x8x128xf32> to vector<8x128xf32>
    %107 = arith.negf %106 : vector<8x128xf32>
    %108 = math.exp %107 : vector<8x128xf32>
    %cst_73 = arith.constant 1.000000e+00 : f32
    %109 = vector.broadcast %cst_73 : f32 to vector<8x128xf32>
    %110 = arith.addf %109, %108 : vector<8x128xf32>
    %111 = arith.divf %109, %110 : vector<8x128xf32>
    %c2_74 = arith.constant 2 : index
    %c0_75 = arith.constant 0 : index
    %c256_76 = arith.constant 256 : index
    %112 = vector.load %arg12[%c2_74, %c0_75, %c256_76] : memref<6x8x512xf32, #tpu.memory_space<vmem>>, vector<1x8x128xf32>
    %113 = vector.shape_cast %112 : vector<1x8x128xf32> to vector<8x128xf32>
    %114 = math.tanh %113 : vector<8x128xf32>
    %c2_77 = arith.constant 2 : index
    %c0_78 = arith.constant 0 : index
    %c384_79 = arith.constant 384 : index
    %115 = vector.load %arg12[%c2_77, %c0_78, %c384_79] : memref<6x8x512xf32, #tpu.memory_space<vmem>>, vector<1x8x128xf32>
    %116 = vector.shape_cast %115 : vector<1x8x128xf32> to vector<8x128xf32>
    %117 = arith.negf %116 : vector<8x128xf32>
    %118 = math.exp %117 : vector<8x128xf32>
    %cst_80 = arith.constant 1.000000e+00 : f32
    %119 = vector.broadcast %cst_80 : f32 to vector<8x128xf32>
    %120 = arith.addf %119, %118 : vector<8x128xf32>
    %121 = arith.divf %119, %120 : vector<8x128xf32>
    %122 = arith.mulf %111, %83 : vector<8x128xf32>
    %123 = arith.mulf %104, %114 : vector<8x128xf32>
    %124 = arith.addf %122, %123 : vector<8x128xf32>
    %125 = math.tanh %124 : vector<8x128xf32>
    %126 = arith.mulf %121, %125 : vector<8x128xf32>
    %127 = arith.truncf %126 : vector<8x128xf32> to vector<8x128xbf16>
    %c2_81 = arith.constant 2 : index
    %c0_82 = arith.constant 0 : index
    %c0_83 = arith.constant 0 : index
    %128 = vector.load %arg13[%c2_81, %c0_82, %c0_83] : memref<6x8x128xbf16, #tpu.memory_space<vmem>>, vector<1x8x128xbf16>
    %129 = vector.shape_cast %128 : vector<1x8x128xbf16> to vector<8x128xbf16>
    %130 = vector.shape_cast %127 : vector<8x128xbf16> to vector<1x8x128xbf16>
    tpu.vector_store %arg13[%c2_81, %c0_82, %c0_83], %130 {strides = array<i32>} : memref<6x8x128xbf16, #tpu.memory_space<vmem>>, vector<1x8x128xbf16>,
    %c3 = arith.constant 3 : index
    %c0_84 = arith.constant 0 : index
    %c0_85 = arith.constant 0 : index
    %131 = vector.load %arg12[%c3, %c0_84, %c0_85] : memref<6x8x512xf32, #tpu.memory_space<vmem>>, vector<1x8x512xf32>
    %132 = vector.shape_cast %131 : vector<1x8x512xf32> to vector<8x512xf32>
    %c0_86 = arith.constant 0 : index
    %c0_87 = arith.constant 0 : index
    %133 = vector.load %arg7[%c0_86, %c0_87] : memref<128x512xbf16, #tpu.memory_space<vmem>>, vector<128x512xbf16>
    %cst_88 = arith.constant dense<0.000000e+00> : vector<8x512xf32>
    %134 = tpu.matmul %127, %133, %cst_88 {dimension_numbers = #tpu.dot_dimension_numbers<[1], [0], [0], [1], [0, 0, 1, 1], [], []>} : vector<8x128xbf16>, vector<128x512xbf16>, vector<8x512xf32> -> vector<8x512xf32>
    %135 = arith.addf %132, %134 : vector<8x512xf32>
    %c3_89 = arith.constant 3 : index
    %c0_90 = arith.constant 0 : index
    %c0_91 = arith.constant 0 : index
    %136 = vector.load %arg12[%c3_89, %c0_90, %c0_91] : memref<6x8x512xf32, #tpu.memory_space<vmem>>, vector<1x8x512xf32>
    %137 = vector.shape_cast %136 : vector<1x8x512xf32> to vector<8x512xf32>
    %138 = vector.shape_cast %135 : vector<8x512xf32> to vector<1x8x512xf32>
    tpu.vector_store %arg12[%c3_89, %c0_90, %c0_91], %138 {strides = array<i32>} : memref<6x8x512xf32, #tpu.memory_space<vmem>>, vector<1x8x512xf32>,
    %c3_92 = arith.constant 3 : index
    %c0_93 = arith.constant 0 : index
    %c0_94 = arith.constant 0 : index
    %139 = vector.load %arg12[%c3_92, %c0_93, %c0_94] : memref<6x8x512xf32, #tpu.memory_space<vmem>>, vector<1x8x128xf32>
    %140 = vector.shape_cast %139 : vector<1x8x128xf32> to vector<8x128xf32>
    %141 = arith.negf %140 : vector<8x128xf32>
    %142 = math.exp %141 : vector<8x128xf32>
    %cst_95 = arith.constant 1.000000e+00 : f32
    %143 = vector.broadcast %cst_95 : f32 to vector<8x128xf32>
    %144 = arith.addf %143, %142 : vector<8x128xf32>
    %145 = arith.divf %143, %144 : vector<8x128xf32>
    %c3_96 = arith.constant 3 : index
    %c0_97 = arith.constant 0 : index
    %c128_98 = arith.constant 128 : index
    %146 = vector.load %arg12[%c3_96, %c0_97, %c128_98] : memref<6x8x512xf32, #tpu.memory_space<vmem>>, vector<1x8x128xf32>
    %147 = vector.shape_cast %146 : vector<1x8x128xf32> to vector<8x128xf32>
    %148 = arith.negf %147 : vector<8x128xf32>
    %149 = math.exp %148 : vector<8x128xf32>
    %cst_99 = arith.constant 1.000000e+00 : f32
    %150 = vector.broadcast %cst_99 : f32 to vector<8x128xf32>
    %151 = arith.addf %150, %149 : vector<8x128xf32>
    %152 = arith.divf %150, %151 : vector<8x128xf32>
    %c3_100 = arith.constant 3 : index
    %c0_101 = arith.constant 0 : index
    %c256_102 = arith.constant 256 : index
    %153 = vector.load %arg12[%c3_100, %c0_101, %c256_102] : memref<6x8x512xf32, #tpu.memory_space<vmem>>, vector<1x8x128xf32>
    %154 = vector.shape_cast %153 : vector<1x8x128xf32> to vector<8x128xf32>
    %155 = math.tanh %154 : vector<8x128xf32>
    %c3_103 = arith.constant 3 : index
    %c0_104 = arith.constant 0 : index
    %c384_105 = arith.constant 384 : index
    %156 = vector.load %arg12[%c3_103, %c0_104, %c384_105] : memref<6x8x512xf32, #tpu.memory_space<vmem>>, vector<1x8x128xf32>
    %157 = vector.shape_cast %156 : vector<1x8x128xf32> to vector<8x128xf32>
    %158 = arith.negf %157 : vector<8x128xf32>
    %159 = math.exp %158 : vector<8x128xf32>
    %cst_106 = arith.constant 1.000000e+00 : f32
    %160 = vector.broadcast %cst_106 : f32 to vector<8x128xf32>
    %161 = arith.addf %160, %159 : vector<8x128xf32>
    %162 = arith.divf %160, %161 : vector<8x128xf32>
    %163 = arith.mulf %152, %124 : vector<8x128xf32>
    %164 = arith.mulf %145, %155 : vector<8x128xf32>
    %165 = arith.addf %163, %164 : vector<8x128xf32>
    %166 = math.tanh %165 : vector<8x128xf32>
    %167 = arith.mulf %162, %166 : vector<8x128xf32>
    %168 = arith.truncf %167 : vector<8x128xf32> to vector<8x128xbf16>
    %c3_107 = arith.constant 3 : index
    %c0_108 = arith.constant 0 : index
    %c0_109 = arith.constant 0 : index
    %169 = vector.load %arg13[%c3_107, %c0_108, %c0_109] : memref<6x8x128xbf16, #tpu.memory_space<vmem>>, vector<1x8x128xbf16>
    %170 = vector.shape_cast %169 : vector<1x8x128xbf16> to vector<8x128xbf16>
    %171 = vector.shape_cast %168 : vector<8x128xbf16> to vector<1x8x128xbf16>
    tpu.vector_store %arg13[%c3_107, %c0_108, %c0_109], %171 {strides = array<i32>} : memref<6x8x128xbf16, #tpu.memory_space<vmem>>, vector<1x8x128xbf16>,
    %c4 = arith.constant 4 : index
    %c0_110 = arith.constant 0 : index
    %c0_111 = arith.constant 0 : index
    %172 = vector.load %arg12[%c4, %c0_110, %c0_111] : memref<6x8x512xf32, #tpu.memory_space<vmem>>, vector<1x8x512xf32>
    %173 = vector.shape_cast %172 : vector<1x8x512xf32> to vector<8x512xf32>
    %c0_112 = arith.constant 0 : index
    %c0_113 = arith.constant 0 : index
    %174 = vector.load %arg7[%c0_112, %c0_113] : memref<128x512xbf16, #tpu.memory_space<vmem>>, vector<128x512xbf16>
    %cst_114 = arith.constant dense<0.000000e+00> : vector<8x512xf32>
    %175 = tpu.matmul %168, %174, %cst_114 {dimension_numbers = #tpu.dot_dimension_numbers<[1], [0], [0], [1], [0, 0, 1, 1], [], []>} : vector<8x128xbf16>, vector<128x512xbf16>, vector<8x512xf32> -> vector<8x512xf32>
    %176 = arith.addf %173, %175 : vector<8x512xf32>
    %c4_115 = arith.constant 4 : index
    %c0_116 = arith.constant 0 : index
    %c0_117 = arith.constant 0 : index
    %177 = vector.load %arg12[%c4_115, %c0_116, %c0_117] : memref<6x8x512xf32, #tpu.memory_space<vmem>>, vector<1x8x512xf32>
    %178 = vector.shape_cast %177 : vector<1x8x512xf32> to vector<8x512xf32>
    %179 = vector.shape_cast %176 : vector<8x512xf32> to vector<1x8x512xf32>
    tpu.vector_store %arg12[%c4_115, %c0_116, %c0_117], %179 {strides = array<i32>} : memref<6x8x512xf32, #tpu.memory_space<vmem>>, vector<1x8x512xf32>,
    %c4_118 = arith.constant 4 : index
    %c0_119 = arith.constant 0 : index
    %c0_120 = arith.constant 0 : index
    %180 = vector.load %arg12[%c4_118, %c0_119, %c0_120] : memref<6x8x512xf32, #tpu.memory_space<vmem>>, vector<1x8x128xf32>
    %181 = vector.shape_cast %180 : vector<1x8x128xf32> to vector<8x128xf32>
    %182 = arith.negf %181 : vector<8x128xf32>
    %183 = math.exp %182 : vector<8x128xf32>
    %cst_121 = arith.constant 1.000000e+00 : f32
    %184 = vector.broadcast %cst_121 : f32 to vector<8x128xf32>
    %185 = arith.addf %184, %183 : vector<8x128xf32>
    %186 = arith.divf %184, %185 : vector<8x128xf32>
    %c4_122 = arith.constant 4 : index
    %c0_123 = arith.constant 0 : index
    %c128_124 = arith.constant 128 : index
    %187 = vector.load %arg12[%c4_122, %c0_123, %c128_124] : memref<6x8x512xf32, #tpu.memory_space<vmem>>, vector<1x8x128xf32>
    %188 = vector.shape_cast %187 : vector<1x8x128xf32> to vector<8x128xf32>
    %189 = arith.negf %188 : vector<8x128xf32>
    %190 = math.exp %189 : vector<8x128xf32>
    %cst_125 = arith.constant 1.000000e+00 : f32
    %191 = vector.broadcast %cst_125 : f32 to vector<8x128xf32>
    %192 = arith.addf %191, %190 : vector<8x128xf32>
    %193 = arith.divf %191, %192 : vector<8x128xf32>
    %c4_126 = arith.constant 4 : index
    %c0_127 = arith.constant 0 : index
    %c256_128 = arith.constant 256 : index
    %194 = vector.load %arg12[%c4_126, %c0_127, %c256_128] : memref<6x8x512xf32, #tpu.memory_space<vmem>>, vector<1x8x128xf32>
    %195 = vector.shape_cast %194 : vector<1x8x128xf32> to vector<8x128xf32>
    %196 = math.tanh %195 : vector<8x128xf32>
    %c4_129 = arith.constant 4 : index
    %c0_130 = arith.constant 0 : index
    %c384_131 = arith.constant 384 : index
    %197 = vector.load %arg12[%c4_129, %c0_130, %c384_131] : memref<6x8x512xf32, #tpu.memory_space<vmem>>, vector<1x8x128xf32>
    %198 = vector.shape_cast %197 : vector<1x8x128xf32> to vector<8x128xf32>
    %199 = arith.negf %198 : vector<8x128xf32>
    %200 = math.exp %199 : vector<8x128xf32>
    %cst_132 = arith.constant 1.000000e+00 : f32
    %201 = vector.broadcast %cst_132 : f32 to vector<8x128xf32>
    %202 = arith.addf %201, %200 : vector<8x128xf32>
    %203 = arith.divf %201, %202 : vector<8x128xf32>
    %204 = arith.mulf %193, %165 : vector<8x128xf32>
    %205 = arith.mulf %186, %196 : vector<8x128xf32>
    %206 = arith.addf %204, %205 : vector<8x128xf32>
    %207 = math.tanh %206 : vector<8x128xf32>
    %208 = arith.mulf %203, %207 : vector<8x128xf32>
    %209 = arith.truncf %208 : vector<8x128xf32> to vector<8x128xbf16>
    %c4_133 = arith.constant 4 : index
    %c0_134 = arith.constant 0 : index
    %c0_135 = arith.constant 0 : index
    %210 = vector.load %arg13[%c4_133, %c0_134, %c0_135] : memref<6x8x128xbf16, #tpu.memory_space<vmem>>, vector<1x8x128xbf16>
    %211 = vector.shape_cast %210 : vector<1x8x128xbf16> to vector<8x128xbf16>
    %212 = vector.shape_cast %209 : vector<8x128xbf16> to vector<1x8x128xbf16>
    tpu.vector_store %arg13[%c4_133, %c0_134, %c0_135], %212 {strides = array<i32>} : memref<6x8x128xbf16, #tpu.memory_space<vmem>>, vector<1x8x128xbf16>,
    %c5 = arith.constant 5 : index
    %c0_136 = arith.constant 0 : index
    %c0_137 = arith.constant 0 : index
    %213 = vector.load %arg12[%c5, %c0_136, %c0_137] : memref<6x8x512xf32, #tpu.memory_space<vmem>>, vector<1x8x512xf32>
    %214 = vector.shape_cast %213 : vector<1x8x512xf32> to vector<8x512xf32>
    %c0_138 = arith.constant 0 : index
    %c0_139 = arith.constant 0 : index
    %215 = vector.load %arg7[%c0_138, %c0_139] : memref<128x512xbf16, #tpu.memory_space<vmem>>, vector<128x512xbf16>
    %cst_140 = arith.constant dense<0.000000e+00> : vector<8x512xf32>
    %216 = tpu.matmul %209, %215, %cst_140 {dimension_numbers = #tpu.dot_dimension_numbers<[1], [0], [0], [1], [0, 0, 1, 1], [], []>} : vector<8x128xbf16>, vector<128x512xbf16>, vector<8x512xf32> -> vector<8x512xf32>
    %217 = arith.addf %214, %216 : vector<8x512xf32>
    %c5_141 = arith.constant 5 : index
    %c0_142 = arith.constant 0 : index
    %c0_143 = arith.constant 0 : index
    %218 = vector.load %arg12[%c5_141, %c0_142, %c0_143] : memref<6x8x512xf32, #tpu.memory_space<vmem>>, vector<1x8x512xf32>
    %219 = vector.shape_cast %218 : vector<1x8x512xf32> to vector<8x512xf32>
    %220 = vector.shape_cast %217 : vector<8x512xf32> to vector<1x8x512xf32>
    tpu.vector_store %arg12[%c5_141, %c0_142, %c0_143], %220 {strides = array<i32>} : memref<6x8x512xf32, #tpu.memory_space<vmem>>, vector<1x8x512xf32>,
    %c5_144 = arith.constant 5 : index
    %c0_145 = arith.constant 0 : index
    %c0_146 = arith.constant 0 : index
    %221 = vector.load %arg12[%c5_144, %c0_145, %c0_146] : memref<6x8x512xf32, #tpu.memory_space<vmem>>, vector<1x8x128xf32>
    %222 = vector.shape_cast %221 : vector<1x8x128xf32> to vector<8x128xf32>
    %223 = arith.negf %222 : vector<8x128xf32>
    %224 = math.exp %223 : vector<8x128xf32>
    %cst_147 = arith.constant 1.000000e+00 : f32
    %225 = vector.broadcast %cst_147 : f32 to vector<8x128xf32>
    %226 = arith.addf %225, %224 : vector<8x128xf32>
    %227 = arith.divf %225, %226 : vector<8x128xf32>
    %c5_148 = arith.constant 5 : index
    %c0_149 = arith.constant 0 : index
    %c128_150 = arith.constant 128 : index
    %228 = vector.load %arg12[%c5_148, %c0_149, %c128_150] : memref<6x8x512xf32, #tpu.memory_space<vmem>>, vector<1x8x128xf32>
    %229 = vector.shape_cast %228 : vector<1x8x128xf32> to vector<8x128xf32>
    %230 = arith.negf %229 : vector<8x128xf32>
    %231 = math.exp %230 : vector<8x128xf32>
    %cst_151 = arith.constant 1.000000e+00 : f32
    %232 = vector.broadcast %cst_151 : f32 to vector<8x128xf32>
    %233 = arith.addf %232, %231 : vector<8x128xf32>
    %234 = arith.divf %232, %233 : vector<8x128xf32>
    %c5_152 = arith.constant 5 : index
    %c0_153 = arith.constant 0 : index
    %c256_154 = arith.constant 256 : index
    %235 = vector.load %arg12[%c5_152, %c0_153, %c256_154] : memref<6x8x512xf32, #tpu.memory_space<vmem>>, vector<1x8x128xf32>
    %236 = vector.shape_cast %235 : vector<1x8x128xf32> to vector<8x128xf32>
    %237 = math.tanh %236 : vector<8x128xf32>
    %c5_155 = arith.constant 5 : index
    %c0_156 = arith.constant 0 : index
    %c384_157 = arith.constant 384 : index
    %238 = vector.load %arg12[%c5_155, %c0_156, %c384_157] : memref<6x8x512xf32, #tpu.memory_space<vmem>>, vector<1x8x128xf32>
    %239 = vector.shape_cast %238 : vector<1x8x128xf32> to vector<8x128xf32>
    %240 = arith.negf %239 : vector<8x128xf32>
    %241 = math.exp %240 : vector<8x128xf32>
    %cst_158 = arith.constant 1.000000e+00 : f32
    %242 = vector.broadcast %cst_158 : f32 to vector<8x128xf32>
    %243 = arith.addf %242, %241 : vector<8x128xf32>
    %244 = arith.divf %242, %243 : vector<8x128xf32>
    %245 = arith.mulf %234, %206 : vector<8x128xf32>
    %246 = arith.mulf %227, %237 : vector<8x128xf32>
    %247 = arith.addf %245, %246 : vector<8x128xf32>
    %248 = math.tanh %247 : vector<8x128xf32>
    %249 = arith.mulf %244, %248 : vector<8x128xf32>
    %250 = arith.truncf %249 : vector<8x128xf32> to vector<8x128xbf16>
    %c5_159 = arith.constant 5 : index
    %c0_160 = arith.constant 0 : index
    %c0_161 = arith.constant 0 : index
    %251 = vector.load %arg13[%c5_159, %c0_160, %c0_161] : memref<6x8x128xbf16, #tpu.memory_space<vmem>>, vector<1x8x128xbf16>
    %252 = vector.shape_cast %251 : vector<1x8x128xbf16> to vector<8x128xbf16>
    %253 = vector.shape_cast %250 : vector<8x128xbf16> to vector<1x8x128xbf16>
    tpu.vector_store %arg13[%c5_159, %c0_160, %c0_161], %253 {strides = array<i32>} : memref<6x8x128xbf16, #tpu.memory_space<vmem>>, vector<1x8x128xbf16>,
    %254 = arith.truncf %14 : vector<8x128xf32> to vector<8x128xbf16>
    %c0_162 = arith.constant 0 : index
    %c0_163 = arith.constant 0 : index
    %255 = vector.load %arg9[%c0_162, %c0_163] : memref<128x128xbf16, #tpu.memory_space<vmem>>, vector<128x128xbf16>
    %cst_164 = arith.constant dense<0.000000e+00> : vector<8x128xf32>
    %256 = tpu.matmul %254, %255, %cst_164 {dimension_numbers = #tpu.dot_dimension_numbers<[1], [0], [0], [1], [0, 0, 1, 1], [], []>} : vector<8x128xbf16>, vector<128x128xbf16>, vector<8x128xf32> -> vector<8x128xf32>
    %c0_165 = arith.constant 0 : index
    %c0_166 = arith.constant 0 : index
    %257 = vector.load %arg10[%c0_165, %c0_166] : memref<1x128xf32, #tpu.memory_space<vmem>>, vector<1x128xf32>
    %258 = vector.broadcast %257 : vector<1x128xf32> to vector<8x128xf32>
    %259 = arith.addf %256, %258 : vector<8x128xf32>
    %c0_167 = arith.constant 0 : index
    %c0_168 = arith.constant 0 : index
    %c0_169 = arith.constant 0 : index
    %260 = vector.load %arg13[%c0_167, %c0_168, %c0_169] : memref<6x8x128xbf16, #tpu.memory_space<vmem>>, vector<6x8x128xbf16>
    %261 = vector.shape_cast %260 : vector<6x8x128xbf16> to vector<48x128xbf16>
    %c0_170 = arith.constant 0 : index
    %c0_171 = arith.constant 0 : index
    %262 = vector.load %arg8[%c0_170, %c0_171] : memref<128x128xbf16, #tpu.memory_space<vmem>>, vector<128x128xbf16>
    %cst_172 = arith.constant dense<0.000000e+00> : vector<48x128xf32>
    %263 = tpu.matmul %261, %262, %cst_172 {dimension_numbers = #tpu.dot_dimension_numbers<[1], [0], [0], [1], [0, 0, 1, 1], [], []>} : vector<48x128xbf16>, vector<128x128xbf16>, vector<48x128xf32> -> vector<48x128xf32>
    %264 = vector.shape_cast %263 : vector<48x128xf32> to vector<6x8x128xf32>
    %265 = vector.shape_cast %259 : vector<8x128xf32> to vector<1x8x128xf32>
    %266 = vector.broadcast %265 : vector<1x8x128xf32> to vector<6x8x128xf32>
    %267 = arith.addf %264, %266 : vector<6x8x128xf32>
    %cst_173 = arith.constant 0.000000e+00 : f32
    %268 = vector.broadcast %cst_173 : f32 to vector<6x8x128xf32>
    %269 = arith.maximumf %267, %268 : vector<6x8x128xf32>
    %270 = arith.truncf %269 : vector<6x8x128xf32> to vector<6x8x128xbf16>
    %c0_174 = arith.constant 0 : index
    %c0_175 = arith.constant 0 : index
    %c0_176 = arith.constant 0 : index
    %271 = vector.load %arg11[%c0_174, %c0_175, %c0_176] : memref<6x8x128xbf16, #tpu.memory_space<vmem>>, vector<6x8x128xbf16>
    tpu.vector_store %arg11[%c0_174, %c0_175, %c0_176], %270 {strides = array<i32>} : memref<6x8x128xbf16, #tpu.memory_space<vmem>>, vector<6x8x128xbf16>,
    return
  }
  func.func @transform_0(%arg0: i32) -> (i32, i32, i32) {
    %c0_i32 = arith.constant 0 : i32
    %c0_i32_0 = arith.constant 0 : i32
    %c0_i32_1 = arith.constant 0 : i32
    return %c0_i32, %arg0, %c0_i32_0 : i32, i32, i32
  }
  func.func @transform_1(%arg0: i32) -> (i32, i32) {
    %c0_i32 = arith.constant 0 : i32
    %c0_i32_0 = arith.constant 0 : i32
    return %arg0, %c0_i32 : i32, i32
  }
  func.func @transform_2(%arg0: i32) -> (i32, i32) {
    %c0_i32 = arith.constant 0 : i32
    %c0_i32_0 = arith.constant 0 : i32
    %c0_i32_1 = arith.constant 0 : i32
    return %c0_i32, %c0_i32_0 : i32, i32
  }
  func.func @transform_3(%arg0: i32) -> (i32, i32) {
    %c0_i32 = arith.constant 0 : i32
    %c0_i32_0 = arith.constant 0 : i32
    %c0_i32_1 = arith.constant 0 : i32
    return %c0_i32, %c0_i32_0 : i32, i32
  }
  func.func @transform_4(%arg0: i32) -> (i32, i32) {
    %c0_i32 = arith.constant 0 : i32
    %c0_i32_0 = arith.constant 0 : i32
    %c0_i32_1 = arith.constant 0 : i32
    return %c0_i32, %c0_i32_0 : i32, i32
  }
  func.func @transform_5(%arg0: i32) -> (i32, i32) {
    %c0_i32 = arith.constant 0 : i32
    %c0_i32_0 = arith.constant 0 : i32
    %c0_i32_1 = arith.constant 0 : i32
    return %c0_i32, %c0_i32_0 : i32, i32
  }
  func.func @transform_6(%arg0: i32) -> (i32, i32) {
    %c0_i32 = arith.constant 0 : i32
    %c0_i32_0 = arith.constant 0 : i32
    %c0_i32_1 = arith.constant 0 : i32
    return %c0_i32, %c0_i32_0 : i32, i32
  }
  func.func @transform_7(%arg0: i32) -> (i32, i32) {
    %c0_i32 = arith.constant 0 : i32
    %c0_i32_0 = arith.constant 0 : i32
    %c0_i32_1 = arith.constant 0 : i32
    return %c0_i32, %c0_i32_0 : i32, i32
  }
  func.func @transform_8(%arg0: i32) -> (i32, i32) {
    %c0_i32 = arith.constant 0 : i32
    %c0_i32_0 = arith.constant 0 : i32
    %c0_i32_1 = arith.constant 0 : i32
    return %c0_i32, %c0_i32_0 : i32, i32
  }
  func.func @transform_9(%arg0: i32) -> (i32, i32) {
    %c0_i32 = arith.constant 0 : i32
    %c0_i32_0 = arith.constant 0 : i32
    %c0_i32_1 = arith.constant 0 : i32
    return %c0_i32, %c0_i32_0 : i32, i32
  }
  func.func @transform_10(%arg0: i32) -> (i32, i32, i32) {
    %c0_i32 = arith.constant 0 : i32
    %c0_i32_0 = arith.constant 0 : i32
    %c0_i32_1 = arith.constant 0 : i32
    return %c0_i32, %arg0, %c0_i32_0 : i32, i32, i32
  }
}

</mosaic_0001>

<bundles_post_ra>
// kernel: tpu_custom_call.1
= control target key start
LH: loop header
LB: loop body
LE: loop exit
PB: predicated region body
PF: predicated region fallthrough
CT: control target
= control target key end

     0   :  { %15 = vsyncpa [#allocation5], 0  ;;  %s5286_s0 = inlined_call_operand.hbm [shape: bf16[6,8,512], index: 0, kind: input, shape index: {}]   ;;  %s5287_s1 = inlined_call_operand.hbm [shape: bf16[8,512], index: 1, kind: input, shape index: {}]   ;;  %s5288_s2 = inlined_call_operand.hbm [shape: bf16[512,128], index: 2, kind: input, shape index: {}]   ;;  %s5289_s3 = inlined_call_operand.vmem [shape: f32[1,128], index: 3, kind: input, shape index: {}]   ;;  %s5290_s4 = inlined_call_operand.hbm [shape: bf16[512,512], index: 4, kind: input, shape index: {}]   ;;  %s5291_s5 = inlined_call_operand.vmem [shape: f32[1,512], index: 5, kind: input, shape index: {}]   ;;  %s5292_s6 = inlined_call_operand.hbm [shape: bf16[128,512], index: 6, kind: input, shape index: {}]   ;;  %s5293_s7 = inlined_call_operand.hbm [shape: bf16[128,128], index: 7, kind: input, shape index: {}]   ;;  %s5294_s8 = inlined_call_operand.hbm [shape: bf16[128,128], index: 8, kind: input, shape index: {}]   ;;  %s5295_s9 = inlined_call_operand.vmem [shape: f32[1,128], index: 9, kind: input, shape index: {}]   ;;  %s5296_s10 = inlined_call_operand.hbm [shape: bf16[6,8,128], index: 10, kind: output, shape index: {}]  }
   0x1   :  { %16 = vsyncpa [#allocation8], 0 }
   0x2   :  { %17 = vsyncpa [#allocation11], 0 }
   0x3   :  { %18 = vsyncpa [#allocation14], 0 }
   0x4   :  { %19 = vsyncpa [#allocation6], 0  ;;  %s4758_s13 = smov [#allocation7]   ;;  %s4572_s17 = scalar_lea.hbm %s5287_s1, 256 }
   0x5   :  { %s38_s14 = sshll.u32 %s4758_s13, 4  ;;  %p4573_p0 = scmp.ne.s32.totalorder %s5287_s1, %s4572_s17  ;;  %s39_s14 = int_to_ptr.vmem [resolvable:$true] %s38_s14 }
   0x6   :  { %p4576_p1 = scmp.lt.u32.totalorder %s4572_s17, %s5287_s1 }
   0x8   :  { %p4578_p2 = pnand %p4576_p1, %p4573_p0 }
   0xa   :  { %4581 = shalt.err (!%p4578_p2)
}
   0xb   :  { %s4582_s22 = scalar_lea.vmem %s39_s14, 256  ;;  %p4587_p4 = scmp.lt.s32.totalorder %s39_s14, %s39_s14 }
   0xc   :  { %p4583_p3 = scmp.ne.s32.totalorder %s39_s14, %s4582_s22  ;;  %p4588_p5 = scmp.lt.s32.totalorder %s4582_s22, %s4582_s22 }
   0xe   :  { %p4589_p6 = por %p4588_p5, %p4587_p4 }
  0x10   :  { %p4590_p7 = pnand %p4589_p6, %p4583_p3 }
  0x12   :  { %4593 = shalt.err (!%p4590_p7)
}
  0x13   :  { %41 = dma.hbm_to_vmem [thread:$0]  %s5287_s1, 256, %s39_s14, [#allocation8]  }
  0x14   :  { %s4759_s25 = smov [#allocation10]   ;;  %s4594_s29 = scalar_lea.hbm %s5290_s4, 16384 }
  0x15   :  { %s61_s26 = sshll.u32 %s4759_s25, 4  ;;  %p4595_p8 = scmp.ne.s32.totalorder %s5290_s4, %s4594_s29  ;;  %s62_s26 = int_to_ptr.vmem [resolvable:$true] %s61_s26 }
  0x16   :  { %p4598_p9 = scmp.lt.u32.totalorder %s4594_s29, %s5290_s4 }
  0x18   :  { %p4600_p10 = pnand %p4598_p9, %p4595_p8 }
  0x1a   :  { %4603 = shalt.err (!%p4600_p10)
}
  0x1b   :  { %s4604_s15 = scalar_lea.vmem %s62_s26, 16384  ;;  %p4609_p12 = scmp.lt.s32.totalorder %s62_s26, %s62_s26 }
  0x1c   :  { %p4605_p11 = scmp.ne.s32.totalorder %s62_s26, %s4604_s15  ;;  %p4610_p13 = scmp.lt.s32.totalorder %s4604_s15, %s4604_s15 }
  0x1e   :  { %p4611_p0 = por %p4610_p13, %p4609_p12 }
  0x20   :  { %p4612_p1 = pnand %p4611_p0, %p4605_p11 }
  0x22   :  { %4615 = shalt.err (!%p4612_p1)
}
  0x23   :  { %s4760_s1 = smov 256   ;;  %s4761_s14 = smov 16  }
  0x24   :  { %67 = dma.hbm_to_vmem [thread:$0]  %s5290_s4, 16384, %s62_s26, [#allocation11], %s4760_s1, %s4760_s1, %s4761_s14  }
  0x25   :  { %s4762_s18 = smov [#allocation13]   ;;  %s4763_s20 = smov [#allocation4]  }
  0x26   :  { %s87_s19 = sshll.u32 %s4762_s18, 4  ;;  %s25_s21 = sshll.u32 %s4763_s20, 4  ;;  %s88_s19 = int_to_ptr.vmem [resolvable:$true] %s87_s19  ;;  %s4855_s21 = int_to_ptr.vmem [resolvable:$true] %s25_s21 }
  0x27   :  { %s4616_s24 = scalar_lea.hbm %s5293_s7, 1024 }
  0x28   :  { %p4617_p2 = scmp.ne.s32.totalorder %s5293_s7, %s4616_s24  ;;  %p4620_p3 = scmp.lt.u32.totalorder %s4616_s24, %s5293_s7 }
  0x2a   :  { %p4622_p4 = pnand %p4620_p3, %p4617_p2 }
  0x2c   :  { %4625 = shalt.err (!%p4622_p4)
}
  0x2d   :  { %s4626_s4 = scalar_lea.vmem %s88_s19, 1024  ;;  %p4631_p6 = scmp.lt.s32.totalorder %s88_s19, %s88_s19 }
  0x2e   :  { %p4627_p5 = scmp.ne.s32.totalorder %s88_s19, %s4626_s4  ;;  %p4632_p7 = scmp.lt.s32.totalorder %s4626_s4, %s4626_s4 }
  0x30   :  { %p4633_p8 = por %p4632_p7, %p4631_p6 }
  0x32   :  { %p4634_p9 = pnand %p4633_p8, %p4627_p5 }
  0x34   :  { %4637 = shalt.err (!%p4634_p9)
}
  0x35   :  { %s4764_s26 = smov 64   ;;  %s4765_s30 = smov 4  }
  0x36   :  { %93 = dma.hbm_to_vmem [thread:$0]  %s5293_s7, 1024, %s88_s19, [#allocation14], %s4764_s26, %s4764_s26, %s4765_s30  }
  0x37   :  { %s4638_s16 = scalar_lea.hbm %s5286_s0, 1536 }
  0x38   :  { %p4639_p10 = scmp.ne.s32.totalorder %s5286_s0, %s4638_s16  ;;  %p4642_p11 = scmp.lt.u32.totalorder %s4638_s16, %s5286_s0 }
  0x3a   :  { %p4644_p12 = pnand %p4642_p11, %p4639_p10 }
  0x3c   :  { %4647 = shalt.err (!%p4644_p12)
}
  0x3d   :  { %s4648_s23 = scalar_lea.vmem %s4855_s21, 1536  ;;  %p4653_p0 = scmp.lt.s32.totalorder %s4855_s21, %s4855_s21 }
  0x3e   :  { %p4649_p13 = scmp.ne.s32.totalorder %s4855_s21, %s4648_s23  ;;  %p4654_p1 = scmp.lt.s32.totalorder %s4648_s23, %s4648_s23 }
  0x40   :  { %p4655_p2 = por %p4654_p1, %p4653_p0 }
  0x42   :  { %p4656_p3 = pnand %p4655_p2, %p4649_p13 }
  0x44   :  { %4659 = shalt.err (!%p4656_p3)
}
  0x45   :  { %31 = dma.hbm_to_vmem [thread:$0]  %s5286_s0, 1536, %s4855_s21, [#allocation5], %s4760_s1, %s4760_s1, %s4761_s14  }
  0x46   :  { %s4766_s24 = smov [#allocation9]   ;;  %s4767_s27 = smov [#allocation12]  }
  0x47   :  { %s47_s25 = sshll.u32 %s4766_s24, 4  ;;  %s75_s28 = sshll.u32 %s4767_s27, 4  ;;  %s48_s25 = int_to_ptr.vmem [resolvable:$true] %s47_s25  ;;  %s4892_s28 = int_to_ptr.vmem [resolvable:$true] %s75_s28 }
  0x48   :  { %s4660_s11 = scalar_lea.hbm %s5288_s2, 4096 }
  0x49   :  { %p4661_p4 = scmp.ne.s32.totalorder %s5288_s2, %s4660_s11  ;;  %p4664_p5 = scmp.lt.u32.totalorder %s4660_s11, %s5288_s2 }
  0x4b   :  { %p4666_p6 = pnand %p4664_p5, %p4661_p4 }
  0x4d   :  { %4669 = shalt.err (!%p4666_p6)
}
  0x4e   :  { %s4670_s0 = scalar_lea.vmem %s48_s25, 4096  ;;  %p4675_p8 = scmp.lt.s32.totalorder %s48_s25, %s48_s25 }
  0x4f   :  { %p4671_p7 = scmp.ne.s32.totalorder %s48_s25, %s4670_s0  ;;  %p4676_p9 = scmp.lt.s32.totalorder %s4670_s0, %s4670_s0 }
  0x51   :  { %p4677_p10 = por %p4676_p9, %p4675_p8 }
  0x53   :  { %p4678_p11 = pnand %p4677_p10, %p4671_p7 }
  0x55   :  { %4681 = shalt.err (!%p4678_p11)
}
  0x56   :  { %53 = dma.hbm_to_vmem [thread:$0]  %s5288_s2, 4096, %s48_s25, [#allocation8], %s4764_s26, %s4764_s26, %s4765_s30  }
  0x57   :  { %s4682_s22 = scalar_lea.hbm %s5292_s6, 4096 }
  0x58   :  { %p4683_p12 = scmp.ne.s32.totalorder %s5292_s6, %s4682_s22  ;;  %p4686_p13 = scmp.lt.u32.totalorder %s4682_s22, %s5292_s6 }
  0x5a   :  { %p4688_p0 = pnand %p4686_p13, %p4683_p12 }
  0x5c   :  { %4691 = shalt.err (!%p4688_p0)
}
  0x5d   :  { %s4692_s27 = scalar_lea.vmem %s4892_s28, 4096  ;;  %p4697_p2 = scmp.lt.s32.totalorder %s4892_s28, %s4892_s28 }
  0x5e   :  { %p4693_p1 = scmp.ne.s32.totalorder %s4892_s28, %s4692_s27  ;;  %p4698_p3 = scmp.lt.s32.totalorder %s4692_s27, %s4692_s27 }
  0x60   :  { %p4699_p4 = por %p4698_p3, %p4697_p2 }
  0x62   :  { %p4700_p5 = pnand %p4699_p4, %p4693_p1 }
  0x64   :  { %4703 = shalt.err (!%p4700_p5)
}
  0x65   :  { %81 = dma.hbm_to_vmem [thread:$0]  %s5292_s6, 4096, %s4892_s28, [#allocation11], %s4760_s1, %s4760_s1, %s4761_s14  }
  0x66   :  { %s4768_s29 = smov [#allocation15]   ;;  %s4704_s13 = scalar_lea.hbm %s5294_s8, 1024 }
  0x67   :  { %s99_s4 = sshll.u32 %s4768_s29, 4  ;;  %p4705_p6 = scmp.ne.s32.totalorder %s5294_s8, %s4704_s13  ;;  %s100_s4 = int_to_ptr.vmem [resolvable:$true] %s99_s4 }
  0x68   :  { %p4708_p7 = scmp.lt.u32.totalorder %s4704_s13, %s5294_s8 }
  0x6a   :  { %p4710_p8 = pnand %p4708_p7, %p4705_p6 }
  0x6c   :  { %4713 = shalt.err (!%p4710_p8)
}
  0x6d   :  { %s4714_s17 = scalar_lea.vmem %s100_s4, 1024  ;;  %p4719_p10 = scmp.lt.s32.totalorder %s100_s4, %s100_s4 }
  0x6e   :  { %p4715_p9 = scmp.ne.s32.totalorder %s100_s4, %s4714_s17  ;;  %p4720_p11 = scmp.lt.s32.totalorder %s4714_s17, %s4714_s17 }
  0x70   :  { %p4721_p12 = por %p4720_p11, %p4719_p10 }
  0x72   :  { %p4722_p13 = pnand %p4721_p12, %p4715_p9 }
  0x74   :  { %4725 = shalt.err (!%p4722_p13)
}
  0x75   :  { %105 = dma.hbm_to_vmem [thread:$0]  %s5294_s8, 1024, %s100_s4, [#allocation14], %s4764_s26, %s4764_s26, %s4765_s30  }
  0x76   :  { %4748 = dma.done.wait [#allocation5], 1536  }
  0x77   :  { %4749 = vsyncadd [#allocation5], 4294965760 }
  0x78   :  { %4750 = dma.done.wait [#allocation8], 4352  }
  0x79   :  { %4751 = vsyncadd [#allocation8], 4294962944 }
  0x7a   :  { %4752 = dma.done.wait [#allocation11], 20480  }
  0x7b   :  { %4753 = vsyncadd [#allocation11], 4294946816 }
  0x7c   :  { %4754 = dma.done.wait [#allocation14], 2048  }
  0x7d   :  { %4755 = vsyncadd [#allocation14], 4294965248  ;;  %v4115_v0 = vld [vmem:[#allocation10 + $0x4] ss:$16 sps:$4 sm:$0xff]   ;;  %v4117_v1 = vld [vmem:[#allocation10 + $0xc] ss:$16 sps:$4 sm:$0xff]  }
  0x7e   :  { %992 = vmatprep.subr.bf16.mxu0 %v4115_v0  ;;  %v4119_v2 = vld [vmem:[#allocation10] ss:$16 sps:$4 sm:$0xff]   ;;  %v4120_v3 = vld [vmem:[#allocation10 + $0x8] ss:$16 sps:$4 sm:$0xff]   ;;  %1118 = vmatprep.subr.bf16.mxu1 %v4117_v1  ;;  %v4121_v4 = vld [vmem:[#allocation10 + $0x24] ss:$16 sps:$4 sm:$0xff]  }
  0x7f   :  { %993 = vmatpush1.bf16.msra.mxu0 %v4119_v2  ;;  %1119 = vmatpush1.bf16.msra.mxu1 %v4120_v3  ;;  %v4123_v5 = vld [vmem:[#allocation10 + $0x2c] ss:$16 sps:$4 sm:$0xff]   ;;  %v4125_v6 = vld [vmem:[#allocation10 + $0x20] ss:$16 sps:$4 sm:$0xff]   ;;  %v4126_v7 = vld [vmem:[#allocation10 + $0x28] ss:$16 sps:$4 sm:$0xff]  }
  0x80   :  { %994 = vmatprep.subr.bf16.mxu0 %v4121_v4  ;;  %1120 = vmatprep.subr.bf16.mxu1 %v4123_v5  ;;  %v4127_v8 = vld [vmem:[#allocation10 + $0x44] ss:$16 sps:$4 sm:$0xff]   ;;  %v4129_v9 = vld [vmem:[#allocation10 + $0x4c] ss:$16 sps:$4 sm:$0xff]   ;;  %v4131_v10 = vld [vmem:[#allocation10 + $0x40] ss:$16 sps:$4 sm:$0xff]  }
  0x81   :  { %v4132_v11 = vld [vmem:[#allocation10 + $0x48] ss:$16 sps:$4 sm:$0xff]   ;;  %v4133_v12 = vld [vmem:[#allocation10 + $0x64] ss:$16 sps:$4 sm:$0xff]   ;;  %v4135_v13 = vld [vmem:[#allocation10 + $0x6c] ss:$16 sps:$4 sm:$0xff]  }
  0x82   :  { %v4137_v14 = vld [vmem:[#allocation10 + $0x60] ss:$16 sps:$4 sm:$0xff]   ;;  %v4138_v15 = vld [vmem:[#allocation10 + $0x68] ss:$16 sps:$4 sm:$0xff]   ;;  %v4139_v16 = vld [vmem:[#allocation10 + $0x84] ss:$16 sps:$4 sm:$0xff]  }
  0x83   :  { %995 = vmatpush1.bf16.msra.mxu0 %v4125_v6  ;;  %1121 = vmatpush1.bf16.msra.mxu1 %v4126_v7  ;;  %v4141_v17 = vld [vmem:[#allocation10 + $0x8c] ss:$16 sps:$4 sm:$0xff]   ;;  %v4143_v18 = vld [vmem:[#allocation10 + $0x80] ss:$16 sps:$4 sm:$0xff]   ;;  %v4144_v19 = vld [vmem:[#allocation10 + $0x88] ss:$16 sps:$4 sm:$0xff]  }
  0x84   :  { %996 = vmatprep.subr.bf16.mxu0 %v4127_v8  ;;  %1122 = vmatprep.subr.bf16.mxu1 %v4129_v9  ;;  %v4145_v20 = vld [vmem:[#allocation10 + $0xa4] ss:$16 sps:$4 sm:$0xff]   ;;  %v4147_v21 = vld [vmem:[#allocation10 + $0xac] ss:$16 sps:$4 sm:$0xff]   ;;  %v4149_v22 = vld [vmem:[#allocation10 + $0xa0] ss:$16 sps:$4 sm:$0xff]  }
  0x85   :  { %v4150_v23 = vld [vmem:[#allocation10 + $0xa8] ss:$16 sps:$4 sm:$0xff]   ;;  %v4151_v24 = vld [vmem:[#allocation10 + $0xc4] ss:$16 sps:$4 sm:$0xff]   ;;  %v4153_v25 = vld [vmem:[#allocation10 + $0xcc] ss:$16 sps:$4 sm:$0xff]  }
  0x86   :  { %v4155_v26 = vld [vmem:[#allocation10 + $0xc0] ss:$16 sps:$4 sm:$0xff]   ;;  %v4156_v27 = vld [vmem:[#allocation10 + $0xc8] ss:$16 sps:$4 sm:$0xff]   ;;  %v4157_v28 = vld [vmem:[#allocation10 + $0xe4] ss:$16 sps:$4 sm:$0xff]  }
  0x87   :  { %997 = vmatpush1.bf16.msra.mxu0 %v4131_v10  ;;  %1123 = vmatpush1.bf16.msra.mxu1 %v4132_v11  ;;  %v4159_v29 = vld [vmem:[#allocation10 + $0xec] ss:$16 sps:$4 sm:$0xff]   ;;  %v4161_v30 = vld [vmem:[#allocation10 + $0xe0] ss:$16 sps:$4 sm:$0xff]   ;;  %v4162_v31 = vld [vmem:[#allocation10 + $0xe8] ss:$16 sps:$4 sm:$0xff]  }
  0x88   :  { %998 = vmatprep.subr.bf16.mxu0 %v4133_v12  ;;  %1124 = vmatprep.subr.bf16.mxu1 %v4135_v13  ;;  %v4163_v32 = vld [vmem:[#allocation10 + $0x104] ss:$16 sps:$4 sm:$0xff]   ;;  %v4165_v33 = vld [vmem:[#allocation10 + $0x10c] ss:$16 sps:$4 sm:$0xff]   ;;  %v4167_v34 = vld [vmem:[#allocation10 + $0x100] ss:$16 sps:$4 sm:$0xff]  }
  0x89   :  { %v4168_v35 = vld [vmem:[#allocation10 + $0x108] ss:$16 sps:$4 sm:$0xff]   ;;  %v4169_v36 = vld [vmem:[#allocation10 + $0x124] ss:$16 sps:$4 sm:$0xff]   ;;  %v4171_v37 = vld [vmem:[#allocation10 + $0x12c] ss:$16 sps:$4 sm:$0xff]  }
  0x8a   :  { %v4173_v38 = vld [vmem:[#allocation10 + $0x120] ss:$16 sps:$4 sm:$0xff]   ;;  %v4174_v39 = vld [vmem:[#allocation10 + $0x128] ss:$16 sps:$4 sm:$0xff]   ;;  %v4175_v40 = vld [vmem:[#allocation10 + $0x144] ss:$16 sps:$4 sm:$0xff]  }
  0x8b   :  { %999 = vmatpush1.bf16.msra.mxu0 %v4137_v14  ;;  %1125 = vmatpush1.bf16.msra.mxu1 %v4138_v15  ;;  %v4177_v41 = vld [vmem:[#allocation10 + $0x14c] ss:$16 sps:$4 sm:$0xff]   ;;  %v4179_v42 = vld [vmem:[#allocation10 + $0x140] ss:$16 sps:$4 sm:$0xff]   ;;  %v4180_v43 = vld [vmem:[#allocation10 + $0x148] ss:$16 sps:$4 sm:$0xff]  }
  0x8c   :  { %1000 = vmatprep.subr.bf16.mxu0 %v4139_v16  ;;  %1126 = vmatprep.subr.bf16.mxu1 %v4141_v17  ;;  %v4181_v44 = vld [vmem:[#allocation10 + $0x164] ss:$16 sps:$4 sm:$0xff]   ;;  %v4183_v45 = vld [vmem:[#allocation10 + $0x16c] ss:$16 sps:$4 sm:$0xff]   ;;  %v4185_v46 = vld [vmem:[#allocation10 + $0x160] ss:$16 sps:$4 sm:$0xff]  }
  0x8d   :  { %v4186_v47 = vld [vmem:[#allocation10 + $0x168] ss:$16 sps:$4 sm:$0xff]   ;;  %v4213_v48 = vld [vmem:[#allocation4 + $0x4] ss:$16 sps:$4 sm:$0xff]   ;;  %v4189_v50 = vld [vmem:[#allocation10 + $0x18c] ss:$16 sps:$4 sm:$0xff]  }
  0x8e   :  { %v4187_v49 = vld [vmem:[#allocation10 + $0x184] ss:$16 sps:$4 sm:$0xff]   ;;  %1024 = vmatprep.mubr.bf16.mxu0 %v4213_v48  ;;  %1150 = vmatprep.mubr.bf16.mxu1 %v4213_v48  ;;  %v4191_v51 = vld [vmem:[#allocation10 + $0x180] ss:$16 sps:$4 sm:$0xff]   ;;  %v4192_v52 = vld [vmem:[#allocation10 + $0x188] ss:$16 sps:$4 sm:$0xff]  }
  0x8f   :  { %1001 = vmatpush1.bf16.msra.mxu0 %v4143_v18  ;;  %1127 = vmatpush1.bf16.msra.mxu1 %v4144_v19  ;;  %v4193_v53 = vld [vmem:[#allocation10 + $0x1a4] ss:$16 sps:$4 sm:$0xff]   ;;  %v4195_v54 = vld [vmem:[#allocation10 + $0x1ac] ss:$16 sps:$4 sm:$0xff]   ;;  %v4197_v55 = vld [vmem:[#allocation10 + $0x1a0] ss:$16 sps:$4 sm:$0xff]  }
  0x90   :  { %1002 = vmatprep.subr.bf16.mxu0 %v4145_v20  ;;  %1128 = vmatprep.subr.bf16.mxu1 %v4147_v21  ;;  %v4198_v56 = vld [vmem:[#allocation10 + $0x1a8] ss:$16 sps:$4 sm:$0xff]   ;;  %v4199_v57 = vld [vmem:[#allocation10 + $0x1c4] ss:$16 sps:$4 sm:$0xff]   ;;  %v4201_v58 = vld [vmem:[#allocation10 + $0x1cc] ss:$16 sps:$4 sm:$0xff]  }
  0x91   :  { %v4203_v59 = vld [vmem:[#allocation10 + $0x1c0] ss:$16 sps:$4 sm:$0xff]   ;;  %v4204_v60 = vld [vmem:[#allocation10 + $0x1c8] ss:$16 sps:$4 sm:$0xff]   ;;  %v4205_v61 = vld [vmem:[#allocation10 + $0x1e4] ss:$16 sps:$4 sm:$0xff]  }
  0x92   :  { %v4207_v62 = vld [vmem:[#allocation10 + $0x1ec] ss:$16 sps:$4 sm:$0xff]   ;;  %v4209_v63 = vld [vmem:[#allocation10 + $0x1e0] ss:$16 sps:$4 sm:$0xff]   ;;  %v4210_v0 = vld [vmem:[#allocation10 + $0x1e8] ss:$16 sps:$4 sm:$0xff]  }
  0x93   :  { %1003 = vmatpush1.bf16.msra.mxu0 %v4149_v22  ;;  %1129 = vmatpush1.bf16.msra.mxu1 %v4150_v23  ;;  %v4216_v1 = vld [vmem:[#allocation10 + $0x204] ss:$16 sps:$4 sm:$0xff]   ;;  %v4219_v2 = vld [vmem:[#allocation10 + $0x20c] ss:$16 sps:$4 sm:$0xff]   ;;  %v4211_v3 = vld [vmem:[#allocation4] ss:$16 sps:$4 sm:$0xff]  }
  0x94   :  { %1004 = vmatprep.subr.bf16.mxu0 %v4151_v24  ;;  %1130 = vmatprep.subr.bf16.mxu1 %v4153_v25  ;;  %v4214_v4 = vld [vmem:[#allocation10 + $0x200] ss:$16 sps:$4 sm:$0xff]   ;;  %v4217_v5 = vld [vmem:[#allocation10 + $0x208] ss:$16 sps:$4 sm:$0xff]   ;;  %v4222_v6 = vld [vmem:[#allocation10 + $0x224] ss:$16 sps:$4 sm:$0xff]  }
  0x95   :  { %v4225_v7 = vld [vmem:[#allocation10 + $0x22c] ss:$16 sps:$4 sm:$0xff]   ;;  %v4220_v8 = vld [vmem:[#allocation10 + $0x220] ss:$16 sps:$4 sm:$0xff]   ;;  %v4223_v9 = vld [vmem:[#allocation10 + $0x228] ss:$16 sps:$4 sm:$0xff]  }
  0x96   :  { %v4228_v10 = vld [vmem:[#allocation10 + $0x244] ss:$16 sps:$4 sm:$0xff]   ;;  %v4231_v11 = vld [vmem:[#allocation10 + $0x24c] ss:$16 sps:$4 sm:$0xff]   ;;  %v4226_v12 = vld [vmem:[#allocation10 + $0x240] ss:$16 sps:$4 sm:$0xff]  }
  0x97   :  { %1005 = vmatpush1.bf16.msra.mxu0 %v4155_v26  ;;  %1131 = vmatpush1.bf16.msra.mxu1 %v4156_v27  ;;  %v4229_v13 = vld [vmem:[#allocation10 + $0x248] ss:$16 sps:$4 sm:$0xff]   ;;  %v4234_v14 = vld [vmem:[#allocation10 + $0x264] ss:$16 sps:$4 sm:$0xff]   ;;  %v4237_v15 = vld [vmem:[#allocation10 + $0x26c] ss:$16 sps:$4 sm:$0xff]  }
  0x98   :  { %1006 = vmatprep.subr.bf16.mxu0 %v4157_v28  ;;  %1132 = vmatprep.subr.bf16.mxu1 %v4159_v29  ;;  %v4232_v16 = vld [vmem:[#allocation10 + $0x260] ss:$16 sps:$4 sm:$0xff]   ;;  %v4235_v17 = vld [vmem:[#allocation10 + $0x268] ss:$16 sps:$4 sm:$0xff]   ;;  %v4240_v18 = vld [vmem:[#allocation10 + $0x284] ss:$16 sps:$4 sm:$0xff]  }
  0x99   :  { %v4243_v19 = vld [vmem:[#allocation10 + $0x28c] ss:$16 sps:$4 sm:$0xff]   ;;  %v4286_v20 = vld [vmem:[#allocation4 + $0x24] ss:$16 sps:$4 sm:$0xff]   ;;  %v4288_v21 = vld [vmem:[#allocation4 + $0x20] ss:$16 sps:$4 sm:$0xff]  }
  0x9a   :  { %v4238_v22 = vld [vmem:[#allocation10 + $0x280] ss:$16 sps:$4 sm:$0xff]   ;;  %v4241_v23 = vld [vmem:[#allocation10 + $0x288] ss:$16 sps:$4 sm:$0xff]   ;;  %v4246_v24 = vld [vmem:[#allocation10 + $0x2a4] ss:$16 sps:$4 sm:$0xff]  }
  0x9b   :  { %1007 = vmatpush1.bf16.msra.mxu0 %v4161_v30  ;;  %1133 = vmatpush1.bf16.msra.mxu1 %v4162_v31  ;;  %v4249_v25 = vld [vmem:[#allocation10 + $0x2ac] ss:$16 sps:$4 sm:$0xff]   ;;  %v4244_v26 = vld [vmem:[#allocation10 + $0x2a0] ss:$16 sps:$4 sm:$0xff]   ;;  %v4247_v27 = vld [vmem:[#allocation10 + $0x2a8] ss:$16 sps:$4 sm:$0xff]  }
  0x9c   :  { %1008 = vmatprep.subr.bf16.mxu0 %v4163_v32  ;;  %1134 = vmatprep.subr.bf16.mxu1 %v4165_v33  ;;  %v4301_v28 = vld [vmem:[#allocation4 + $0x44] ss:$16 sps:$4 sm:$0xff]   ;;  %v4303_v29 = vld [vmem:[#allocation4 + $0x40] ss:$16 sps:$4 sm:$0xff]   ;;  %v4255_v31 = vld [vmem:[#allocation10 + $0x2cc] ss:$16 sps:$4 sm:$0xff]  }
  0x9d   :  { %v4252_v30 = vld [vmem:[#allocation10 + $0x2c4] ss:$16 sps:$4 sm:$0xff]   ;;  %v4250_v32 = vld [vmem:[#allocation10 + $0x2c0] ss:$16 sps:$4 sm:$0xff]   ;;  %v4253_v33 = vld [vmem:[#allocation10 + $0x2c8] ss:$16 sps:$4 sm:$0xff]  }
  0x9e   :  { %v4279_v48 = vld [vmem:[#allocation10 + $0x34c] ss:$16 sps:$4 sm:$0xff]   ;;  %vm4771_vm0 = vmmov 0  }
  0x9f   :  { %1009 = vmatpush1.bf16.msra.mxu0 %v4167_v34  ;;  %1135 = vmatpush1.bf16.msra.mxu1 %v4168_v35  ;;  %v4258_v34 = vld [vmem:[#allocation10 + $0x2e4] ss:$16 sps:$4 sm:$0xff]   ;;  %v4261_v35 = vld [vmem:[#allocation10 + $0x2ec] ss:$16 sps:$4 sm:$0xff]  }
  0xa0   :  { %1010 = vmatprep.subr.bf16.mxu0 %v4169_v36  ;;  %1136 = vmatprep.subr.bf16.mxu1 %v4171_v37  ;;  %v4318_v36 = vld [vmem:[#allocation4 + $0xc] ss:$16 sps:$4 sm:$0xff]   ;;  %v4256_v37 = vld [vmem:[#allocation10 + $0x2e0] ss:$16 sps:$4 sm:$0xff]  }
  0xa3   :  { %1011 = vmatpush1.bf16.msra.mxu0 %v4173_v38  ;;  %1137 = vmatpush1.bf16.msra.mxu1 %v4174_v39  ;;  %v4259_v38 = vld [vmem:[#allocation10 + $0x2e8] ss:$16 sps:$4 sm:$0xff]   ;;  %v4264_v39 = vld [vmem:[#allocation10 + $0x304] ss:$16 sps:$4 sm:$0xff]  }
  0xa4   :  { %1012 = vmatprep.subr.bf16.mxu0 %v4175_v40  ;;  %1138 = vmatprep.subr.bf16.mxu1 %v4177_v41  ;;  %v4267_v40 = vld [vmem:[#allocation10 + $0x30c] ss:$16 sps:$4 sm:$0xff]   ;;  %v4262_v41 = vld [vmem:[#allocation10 + $0x300] ss:$16 sps:$4 sm:$0xff]  }
  0xa7   :  { %1013 = vmatpush1.bf16.msra.mxu0 %v4179_v42  ;;  %1139 = vmatpush1.bf16.msra.mxu1 %v4180_v43  ;;  %v4265_v42 = vld [vmem:[#allocation10 + $0x308] ss:$16 sps:$4 sm:$0xff]   ;;  %v4270_v43 = vld [vmem:[#allocation10 + $0x324] ss:$16 sps:$4 sm:$0xff]  }
  0xa8   :  { %1014 = vmatprep.subr.bf16.mxu0 %v4181_v44  ;;  %1140 = vmatprep.subr.bf16.mxu1 %v4183_v45  ;;  %v4273_v44 = vld [vmem:[#allocation10 + $0x32c] ss:$16 sps:$4 sm:$0xff]   ;;  %v4268_v45 = vld [vmem:[#allocation10 + $0x320] ss:$16 sps:$4 sm:$0xff]  }
  0xab   :  { %1015 = vmatpush1.bf16.msra.mxu0 %v4185_v46  ;;  %1141 = vmatpush1.bf16.msra.mxu1 %v4186_v47  ;;  %v4271_v46 = vld [vmem:[#allocation10 + $0x328] ss:$16 sps:$4 sm:$0xff]   ;;  %v4276_v47 = vld [vmem:[#allocation10 + $0x344] ss:$16 sps:$4 sm:$0xff]  }
  0xac   :  { %1016 = vmatprep.subr.bf16.mxu0 %v4187_v49  ;;  %1142 = vmatprep.subr.bf16.mxu1 %v4189_v50  ;;  %v4274_v49 = vld [vmem:[#allocation10 + $0x340] ss:$16 sps:$4 sm:$0xff]   ;;  %v4277_v50 = vld [vmem:[#allocation10 + $0x348] ss:$16 sps:$4 sm:$0xff]  }
  0xaf   :  { %1017 = vmatpush1.bf16.msra.mxu0 %v4191_v51  ;;  %1143 = vmatpush1.bf16.msra.mxu1 %v4192_v52  ;;  %v4282_v51 = vld [vmem:[#allocation10 + $0x364] ss:$16 sps:$4 sm:$0xff]   ;;  %v4285_v52 = vld [vmem:[#allocation10 + $0x36c] ss:$16 sps:$4 sm:$0xff]  }
  0xb0   :  { %1018 = vmatprep.subr.bf16.mxu0 %v4193_v53  ;;  %1144 = vmatprep.subr.bf16.mxu1 %v4195_v54  ;;  %v4280_v53 = vld [vmem:[#allocation10 + $0x360] ss:$16 sps:$4 sm:$0xff]   ;;  %v4283_v54 = vld [vmem:[#allocation10 + $0x368] ss:$16 sps:$4 sm:$0xff]  }
  0xb3   :  { %1019 = vmatpush1.bf16.msra.mxu0 %v4197_v55  ;;  %1145 = vmatpush1.bf16.msra.mxu1 %v4198_v56  ;;  %v4291_v55 = vld [vmem:[#allocation10 + $0x384] ss:$16 sps:$4 sm:$0xff]   ;;  %v4294_v56 = vld [vmem:[#allocation10 + $0x38c] ss:$16 sps:$4 sm:$0xff]  }
  0xb4   :  { %1020 = vmatprep.subr.bf16.mxu0 %v4199_v57  ;;  %1146 = vmatprep.subr.bf16.mxu1 %v4201_v58  ;;  %v4289_v57 = vld [vmem:[#allocation10 + $0x380] ss:$16 sps:$4 sm:$0xff]   ;;  %v4292_v58 = vld [vmem:[#allocation10 + $0x388] ss:$16 sps:$4 sm:$0xff]  }
  0xb7   :  { %1021 = vmatpush1.bf16.msra.mxu0 %v4203_v59  ;;  %1147 = vmatpush1.bf16.msra.mxu1 %v4204_v60  ;;  %v4297_v59 = vld [vmem:[#allocation10 + $0x3a4] ss:$16 sps:$4 sm:$0xff]   ;;  %v4300_v60 = vld [vmem:[#allocation10 + $0x3ac] ss:$16 sps:$4 sm:$0xff]  }
  0xb8   :  { %1022 = vmatprep.subr.bf16.mxu0 %v4205_v61  ;;  %1148 = vmatprep.subr.bf16.mxu1 %v4207_v62  ;;  %v4295_v61 = vld [vmem:[#allocation10 + $0x3a0] ss:$16 sps:$4 sm:$0xff]   ;;  %v4298_v62 = vld [vmem:[#allocation10 + $0x3a8] ss:$16 sps:$4 sm:$0xff]  }
  0xbb   :  { %1023 = vmatpush1.bf16.msra.mxu0 %v4209_v63  ;;  %1149 = vmatpush1.bf16.msra.mxu1 %v4210_v0  ;;  %v4306_v63 = vld [vmem:[#allocation10 + $0x3c4] ss:$16 sps:$4 sm:$0xff]   ;;  %v4309_v0 = vld [vmem:[#allocation10 + $0x3cc] ss:$16 sps:$4 sm:$0xff]  }
  0xbc   :  { %1055 = vmatprep.subr.bf16.mxu0 %v4216_v1  ;;  %1181 = vmatprep.subr.bf16.mxu1 %v4219_v2  ;;  %v4304_v1 = vld [vmem:[#allocation10 + $0x3c0] ss:$16 sps:$4 sm:$0xff]   ;;  %v4307_v2 = vld [vmem:[#allocation10 + $0x3c8] ss:$16 sps:$4 sm:$0xff]  }
  0xbe   :  { %1025 = vmatmul.mubr.bf16.vlgmr.msra.gmra.mrb[0].mxu0 %v4211_v3  ;;  %1151 = vmatmul.mubr.bf16.vlgmr.msra.gmra.mrb[0].mxu1 %v4211_v3  ;;  %v4312_v3 = vld [vmem:[#allocation10 + $0x3e4] ss:$16 sps:$4 sm:$0xff]  }
  0xbf   :  { %1056 = vmatpush1.bf16.msra.mxu0 %v4214_v4  ;;  %1182 = vmatpush1.bf16.msra.mxu1 %v4217_v5  ;;  %v4315_v4 = vld [vmem:[#allocation10 + $0x3ec] ss:$16 sps:$4 sm:$0xff]   ;;  %v4310_v5 = vld [vmem:[#allocation10 + $0x3e0] ss:$16 sps:$4 sm:$0xff]  }
  0xc0   :  { %1057 = vmatprep.subr.bf16.mxu0 %v4222_v6  ;;  %1183 = vmatprep.subr.bf16.mxu1 %v4225_v7  ;;  %v4313_v6 = vld [vmem:[#allocation10 + $0x3e8] ss:$16 sps:$4 sm:$0xff]   ;;  %v4325_v7 = vld [vmem:[#allocation9 + $0x40] sm:$0xff]  }
  0xc1   :  { %1034 = vmatprep.mubr.bf16.mxu0 %v4286_v20  ;;  %1160 = vmatprep.mubr.bf16.mxu1 %v4286_v20  ;;  %v4322_v20 = vld [vmem:[#allocation4 + $0x4c] ss:$16 sps:$4 sm:$0xff]  }
  0xc3   :  { %1058 = vmatpush1.bf16.msra.mxu0 %v4220_v8  ;;  %1184 = vmatpush1.bf16.msra.mxu1 %v4223_v9  ;;  %v4327_v8 = vld [vmem:[#allocation9 + $0xc0] sm:$0xff]   ;;  %v4316_v9 = vld [vmem:[#allocation4 + $0x8] ss:$16 sps:$4 sm:$0xff]  }
  0xc4   :  { %1059 = vmatprep.subr.bf16.mxu0 %v4228_v10  ;;  %1185 = vmatprep.subr.bf16.mxu1 %v4231_v11  ;;  %v4319_v10 = vld [vmem:[#allocation4 + $0x2c] ss:$16 sps:$4 sm:$0xff]   ;;  %v4326_v11 = vld [vmem:[#allocation9] sm:$0xff]  }
  0xc6   :  { %1035 = vmatmul.mubr.bf16.gmra.mrb[4].mxu0 %v4288_v21  ;;  %1161 = vmatmul.mubr.bf16.gmra.mrb[4].mxu1 %v4288_v21  ;;  %v4334_v21 = vld [vmem:[#allocation9 + $0x10] sm:$0xff]  }
  0xc7   :  { %1060 = vmatpush1.bf16.msra.mxu0 %v4226_v12  ;;  %1186 = vmatpush1.bf16.msra.mxu1 %v4229_v13  ;;  %v4328_v12 = vld [vmem:[#allocation9 + $0x80] sm:$0xff]   ;;  %v4329_v13 = vld [vmem:[#allocation9 + $0x48] sm:$0xff]  }
  0xc8   :  { %1061 = vmatprep.subr.bf16.mxu0 %v4234_v14  ;;  %1187 = vmatprep.subr.bf16.mxu1 %v4237_v15  ;;  %v4331_v14 = vld [vmem:[#allocation9 + $0xc8] sm:$0xff]  }
  0xc9   :  { %1044 = vmatprep.mubr.bf16.mxu0 %v4301_v28  ;;  %1170 = vmatprep.mubr.bf16.mxu1 %v4301_v28  ;;  %v4330_v15 = vld [vmem:[#allocation9 + $0x8] sm:$0xff]  }
  0xca   :  { %v4324_v28 = vld [vmem:[#allocation4 + $0x48] ss:$16 sps:$4 sm:$0xff]  }
  0xcb   :  { %1062 = vmatpush1.bf16.msra.mxu0 %v4232_v16  ;;  %1188 = vmatpush1.bf16.msra.mxu1 %v4235_v17  ;;  %v4332_v16 = vld [vmem:[#allocation9 + $0x88] sm:$0xff]   ;;  %v4333_v17 = vld [vmem:[#allocation9 + $0x50] sm:$0xff]  }
  0xcc   :  { %1063 = vmatprep.subr.bf16.mxu0 %v4240_v18  ;;  %1189 = vmatprep.subr.bf16.mxu1 %v4243_v19  ;;  %v4335_v18 = vld [vmem:[#allocation9 + $0xd0] sm:$0xff]   ;;  %v4321_v19 = vld [vmem:[#allocation4 + $0x28] ss:$16 sps:$4 sm:$0xff]  }
  0xce   :  { %1045 = vmatmul.mubr.bf16.gmra.mrb[8].mxu0 %v4303_v29  ;;  %1171 = vmatmul.mubr.bf16.gmra.mrb[8].mxu1 %v4303_v29  ;;  %v4342_v29 = vld [vmem:[#allocation9 + $0x20] sm:$0xff]  }
  0xcf   :  { %1064 = vmatpush1.bf16.msra.mxu0 %v4238_v22  ;;  %1190 = vmatpush1.bf16.msra.mxu1 %v4241_v23  ;;  %v4336_v22 = vld [vmem:[#allocation9 + $0x90] sm:$0xff]   ;;  %v4337_v23 = vld [vmem:[#allocation9 + $0x58] sm:$0xff]  }
  0xd0   :  { %1065 = vmatprep.subr.bf16.mxu0 %v4246_v24  ;;  %1191 = vmatprep.subr.bf16.mxu1 %v4249_v25  ;;  %v4339_v24 = vld [vmem:[#allocation9 + $0xd8] sm:$0xff]  }
  0xd1   :  { %1087 = vmatprep.mubr.bf16.mxu0 %v4318_v36  ;;  %1213 = vmatprep.mubr.bf16.mxu1 %v4318_v36  ;;  %v4338_v25 = vld [vmem:[#allocation9 + $0x18] sm:$0xff]   ;;  %v4349_v36 = vld [vmem:[#allocation9 + $0x70] sm:$0xff]  }
  0xd3   :  { %1066 = vmatpush1.bf16.msra.mxu0 %v4244_v26  ;;  %1192 = vmatpush1.bf16.msra.mxu1 %v4247_v27  ;;  %v4340_v26 = vld [vmem:[#allocation9 + $0x98] sm:$0xff]   ;;  %v4341_v27 = vld [vmem:[#allocation9 + $0x60] sm:$0xff]  }
  0xd4   :  { %1067 = vmatprep.subr.bf16.mxu0 %v4252_v30  ;;  %1193 = vmatprep.subr.bf16.mxu1 %v4255_v31  ;;  %v4343_v30 = vld [vmem:[#allocation9 + $0xe0] sm:$0xff]  }
  0xd5   :  { %v4344_v31 = vld [vmem:[#allocation9 + $0xa0] sm:$0xff]  }
  0xd7   :  { %1068 = vmatpush1.bf16.msra.mxu0 %v4250_v32  ;;  %1194 = vmatpush1.bf16.msra.mxu1 %v4253_v33  ;;  %v4345_v32 = vld [vmem:[#allocation9 + $0x68] sm:$0xff]  }
  0xd8   :  { %1069 = vmatprep.subr.bf16.mxu0 %v4258_v34  ;;  %1195 = vmatprep.subr.bf16.mxu1 %v4261_v35  ;;  %v4346_v33 = vld [vmem:[#allocation9 + $0x28] sm:$0xff]  }
  0xd9   :  { %v4347_v34 = vld [vmem:[#allocation9 + $0xe8] sm:$0xff]  }
  0xda   :  { %v4348_v35 = vld [vmem:[#allocation9 + $0xa8] sm:$0xff]  }
  0xdb   :  { %1070 = vmatpush1.bf16.msra.mxu0 %v4256_v37  ;;  %1196 = vmatpush1.bf16.msra.mxu1 %v4259_v38  ;;  %v4350_v37 = vld [vmem:[#allocation9 + $0x30] sm:$0xff]  }
  0xdc   :  { %1071 = vmatprep.subr.bf16.mxu0 %v4264_v39  ;;  %1197 = vmatprep.subr.bf16.mxu1 %v4267_v40  ;;  %v4351_v38 = vld [vmem:[#allocation9 + $0xf0] sm:$0xff]   ;;  %v4353_v40 = vld [vmem:[#allocation9 + $0x78] sm:$0xff]  }
  0xdd   :  { %v4352_v39 = vld [vmem:[#allocation9 + $0xb0] sm:$0xff]  }
  0xdf   :  { %1072 = vmatpush1.bf16.msra.mxu0 %v4262_v41  ;;  %1198 = vmatpush1.bf16.msra.mxu1 %v4265_v42  ;;  %v4354_v41 = vld [vmem:[#allocation9 + $0x38] sm:$0xff]  }
  0xe0   :  { %1073 = vmatprep.subr.bf16.mxu0 %v4270_v43  ;;  %1199 = vmatprep.subr.bf16.mxu1 %v4273_v44  ;;  %v4355_v42 = vld [vmem:[#allocation9 + $0xf8] sm:$0xff]   ;;  %v1268_v43 = vld [vmem:[#allocation7] sm:$0xff] }
  0xe1   :  { %v3690_v44 = vcombine.high %v1268_v43, %v1268_v43 }
  0xe3   :  { %1074 = vmatpush1.bf16.msra.mxu0 %v4268_v45  ;;  %1200 = vmatpush1.bf16.msra.mxu1 %v4271_v46  ;;  %v4358_v45 = vld [vmem:[#allocation9 + $0xb8] sm:$0xff]   ;;  %v3689_v46 = vcombine.low %v1268_v43, %v1268_v43 }
  0xe4   :  { %1075 = vmatprep.subr.bf16.mxu0 %v4276_v47  ;;  %1201 = vmatprep.subr.bf16.mxu1 %v4279_v48  ;;  %v1269_v47 = vld [vmem:[#allocation7 + $0x8] sm:$0xff] }
  0xe5   :  { %v3692_v48 = vcombine.high %v1269_v47, %v1269_v47 }
  0xe7   :  { %1076 = vmatpush1.bf16.msra.mxu0 %v4274_v49  ;;  %1202 = vmatpush1.bf16.msra.mxu1 %v4277_v50  ;;  %v4944_v49 = vld [vmem:[#allocation12 + $0x4] ss:$16 sps:$4 sm:$0xff]   ;;  %v4946_v50 = vld [vmem:[#allocation12 + $0xc] ss:$16 sps:$4 sm:$0xff]  }
  0xe8   :  { %1077 = vmatprep.subr.bf16.mxu0 %v4282_v51  ;;  %1203 = vmatprep.subr.bf16.mxu1 %v4285_v52  ;;  %v3691_v51 = vcombine.low %v1269_v47, %v1269_v47  ;;  %v4948_v52 = vld [vmem:[#allocation12] ss:$16 sps:$4 sm:$0xff]  }
  0xeb   :  { %1078 = vmatpush1.bf16.msra.mxu0 %v4280_v53  ;;  %1204 = vmatpush1.bf16.msra.mxu1 %v4283_v54  ;;  %v4950_v53 = vld [vmem:[#allocation12 + $0x8] ss:$16 sps:$4 sm:$0xff]   ;;  %v4956_v54 = vld [vmem:[#allocation12 + $0x24] ss:$16 sps:$4 sm:$0xff]  }
  0xec   :  { %1079 = vmatprep.subr.bf16.mxu0 %v4291_v55  ;;  %1205 = vmatprep.subr.bf16.mxu1 %v4294_v56  ;;  %v4958_v55 = vld [vmem:[#allocation12 + $0x2c] ss:$16 sps:$4 sm:$0xff]   ;;  %v4960_v56 = vld [vmem:[#allocation12 + $0x20] ss:$16 sps:$4 sm:$0xff]  }
  0xef   :  { %1080 = vmatpush1.bf16.msra.mxu0 %v4289_v57  ;;  %1206 = vmatpush1.bf16.msra.mxu1 %v4292_v58  ;;  %v4962_v57 = vld [vmem:[#allocation12 + $0x28] ss:$16 sps:$4 sm:$0xff]   ;;  %v4968_v58 = vld [vmem:[#allocation12 + $0x44] ss:$16 sps:$4 sm:$0xff]  }
  0xf0   :  { %1081 = vmatprep.subr.bf16.mxu0 %v4297_v59  ;;  %1207 = vmatprep.subr.bf16.mxu1 %v4300_v60  ;;  %v4970_v59 = vld [vmem:[#allocation12 + $0x4c] ss:$16 sps:$4 sm:$0xff]   ;;  %v4972_v60 = vld [vmem:[#allocation12 + $0x40] ss:$16 sps:$4 sm:$0xff]  }
  0xf3   :  { %1082 = vmatpush1.bf16.msra.mxu0 %v4295_v61  ;;  %1208 = vmatpush1.bf16.msra.mxu1 %v4298_v62  ;;  %v4974_v61 = vld [vmem:[#allocation12 + $0x48] ss:$16 sps:$4 sm:$0xff]   ;;  %v4980_v62 = vld [vmem:[#allocation12 + $0x64] ss:$16 sps:$4 sm:$0xff]  }
  0xf4   :  { %1083 = vmatprep.subr.bf16.mxu0 %v4306_v63  ;;  %1209 = vmatprep.subr.bf16.mxu1 %v4309_v0  ;;  %v4982_v63 = vld [vmem:[#allocation12 + $0x6c] ss:$16 sps:$4 sm:$0xff]   ;;  %v4984_v0 = vld [vmem:[#allocation12 + $0x60] ss:$16 sps:$4 sm:$0xff]  }
  0xf7   :  { %1084 = vmatpush1.bf16.msra.mxu0 %v4304_v1  ;;  %1210 = vmatpush1.bf16.msra.mxu1 %v4307_v2  ;;  %v4986_v1 = vld [vmem:[#allocation12 + $0x68] ss:$16 sps:$4 sm:$0xff]   ;;  %v4992_v2 = vld [vmem:[#allocation12 + $0x84] ss:$16 sps:$4 sm:$0xff]  }
  0xf8   :  { %1085 = vmatprep.subr.bf16.mxu0 %v4312_v3  ;;  %1211 = vmatprep.subr.bf16.mxu1 %v4315_v4  ;;  %v4994_v3 = vld [vmem:[#allocation12 + $0x8c] ss:$16 sps:$4 sm:$0xff]   ;;  %v4996_v4 = vld [vmem:[#allocation12 + $0x80] ss:$16 sps:$4 sm:$0xff]  }
  0xfb   :  { %1086 = vmatpush1.bf16.msra.mxu0 %v4310_v5  ;;  %1212 = vmatpush1.bf16.msra.mxu1 %v4313_v6  ;;  %v4998_v5 = vld [vmem:[#allocation12 + $0x88] ss:$16 sps:$4 sm:$0xff]   ;;  %v5002_v6 = vld [vmem:[#allocation12 + $0xa4] ss:$16 sps:$4 sm:$0xff]  }
  0xfc   :  { %3940 = vmatprep.subr.bf16.mxu0 %v4325_v7  ;;  %3962 = vmatprep.subr.bf16.mxu1 %v4327_v8  ;;  %v5004_v7 = vld [vmem:[#allocation12 + $0xac] ss:$16 sps:$4 sm:$0xff]   ;;  %v5008_v8 = vld [vmem:[#allocation12 + $0xa0] ss:$16 sps:$4 sm:$0xff]  }
  0xfe   :  { %1088 = vmatmul.mubr.bf16.vlgmr.msra.gmra.mrb[0].mxu0 %v4316_v9  ;;  %1214 = vmatmul.mubr.bf16.vlgmr.msra.gmra.mrb[0].mxu1 %v4316_v9  ;;  %v5010_v9 = vld [vmem:[#allocation12 + $0xa8] ss:$16 sps:$4 sm:$0xff]  }
  0xff   :  { %1097 = vmatprep.mubr.bf16.mxu0 %v4319_v10  ;;  %1223 = vmatprep.mubr.bf16.mxu1 %v4319_v10  ;;  %v5014_v10 = vld [vmem:[#allocation12 + $0xc4] ss:$16 sps:$4 sm:$0xff]  }
 0x100   :  { %3941 = vmatpush3.bf16.msra.mxu0 %v4326_v11  ;;  %3963 = vmatpush3.bf16.msra.mxu1 %v4328_v12  ;;  %v5016_v11 = vld [vmem:[#allocation12 + $0xcc] ss:$16 sps:$4 sm:$0xff]   ;;  %v5297_v12 = vmov 0  }
 0x101   :  { %3942 = vmatprep.subr.bf16.mxu0 %v4329_v13  ;;  %3964 = vmatprep.subr.bf16.mxu1 %v4331_v14  ;;  %v5022_v13 = vld [vmem:[#allocation12 + $0xc0] ss:$16 sps:$4 sm:$0xff]   ;;  %v5024_v14 = vld [vmem:[#allocation12 + $0xc8] ss:$16 sps:$4 sm:$0xff]  }
 0x104   :  { %3943 = vmatpush3.bf16.msra.mxu0 %v4330_v15  ;;  %3965 = vmatpush3.bf16.msra.mxu1 %v4332_v16  ;;  %v5028_v15 = vld [vmem:[#allocation12 + $0xe4] ss:$16 sps:$4 sm:$0xff]   ;;  %v5030_v16 = vld [vmem:[#allocation12 + $0xec] ss:$16 sps:$4 sm:$0xff]  }
 0x105   :  { %3944 = vmatprep.subr.bf16.mxu0 %v4333_v17  ;;  %3966 = vmatprep.subr.bf16.mxu1 %v4335_v18  ;;  %v5034_v17 = vld [vmem:[#allocation12 + $0xe0] ss:$16 sps:$4 sm:$0xff]   ;;  %v5036_v18 = vld [vmem:[#allocation12 + $0xe8] ss:$16 sps:$4 sm:$0xff]  }
 0x106   :  { %1098 = vmatmul.mubr.bf16.gmra.mrb[4].mxu0 %v4321_v19  ;;  %1224 = vmatmul.mubr.bf16.gmra.mrb[4].mxu1 %v4321_v19  ;;  %v272_v19 = vlaneseq }
 0x107   :  { %1107 = vmatprep.mubr.bf16.mxu0 %v4322_v20  ;;  %1233 = vmatprep.mubr.bf16.mxu1 %v4322_v20 }
 0x108   :  { %3945 = vmatpush3.bf16.msra.mxu0 %v4334_v21  ;;  %3967 = vmatpush3.bf16.msra.mxu1 %v4336_v22  ;;  %v273_v20 = vshrl.u32 %v272_v19, 7  ;;  %v270_v22 = vld [vmem:[%s5291_s5] sm:$0xf] }
 0x109   :  { %3946 = vmatprep.subr.bf16.mxu0 %v4337_v23  ;;  %3968 = vmatprep.subr.bf16.mxu1 %v4339_v24 }
 0x10a   :  { %v274_v21 = vsub.s32 0, %v273_v20  ;;  %v278_v23 = vsub.s32 1, %v273_v20 }
 0x10c   :  { %3947 = vmatpush3.bf16.msra.mxu0 %v4338_v25  ;;  %3969 = vmatpush3.bf16.msra.mxu1 %v4340_v26  ;;  %v275_v24 = vrot.slane %v270_v22, %v274_v21  ;;  %v282_v25 = vsub.s32 2, %v273_v20  ;;  %v5047_v26 = vrot.slane %v270_v22, %v278_v23 }
 0x10d   :  { %3948 = vmatprep.subr.bf16.mxu0 %v4341_v27  ;;  %3970 = vmatprep.subr.bf16.mxu1 %v4343_v30  ;;  %v286_v27 = vsub.s32 3, %v273_v20 }
 0x10e   :  { %1108 = vmatmul.mubr.bf16.gmra.mrb[8].mxu0 %v4324_v28  ;;  %1234 = vmatmul.mubr.bf16.gmra.mrb[8].mxu1 %v4324_v28 }
 0x10f   :  { %1579 = vmatprep.mubr.bf16.mxu0 %v3690_v44  ;;  %1619 = vmatprep.mubr.bf16.mxu1 %v3692_v48 }
 0x110   :  { %3949 = vmatpush3.bf16.msra.mxu0 %v4342_v29  ;;  %3971 = vmatpush3.bf16.msra.mxu1 %v4344_v31  ;;  %v283_v31 = vrot.slane %v270_v22, %v282_v25 }
 0x111   :  { %3950 = vmatprep.subr.bf16.mxu0 %v4345_v32  ;;  %3972 = vmatprep.subr.bf16.mxu1 %v4347_v34 }
 0x114   :  { %3951 = vmatpush3.bf16.msra.mxu0 %v4346_v33  ;;  %3973 = vmatpush3.bf16.msra.mxu1 %v4348_v35  ;;  %v287_v35 = vrot.slane %v270_v22, %v286_v27 }
 0x115   :  { %3952 = vmatprep.subr.bf16.mxu0 %v4349_v36  ;;  %3974 = vmatprep.subr.bf16.mxu1 %v4351_v38 }
 0x118   :  { %3953 = vmatpush3.bf16.msra.mxu0 %v4350_v37  ;;  %3975 = vmatpush3.bf16.msra.mxu1 %v4352_v39 }
 0x119   :  { %3954 = vmatprep.subr.bf16.mxu0 %v4353_v40  ;;  %3976 = vmatprep.subr.bf16.mxu1 %v4355_v42 }
 0x11c   :  { %3955 = vmatpush3.bf16.msra.mxu0 %v4354_v41  ;;  %3977 = vmatpush3.bf16.msra.mxu1 %v4358_v45 }
 0x11d   :  { %1854 = vmatprep.subr.bf16.mxu0 %v4944_v49  ;;  %1895 = vmatprep.subr.bf16.mxu1 %v4946_v50 }
 0x11f   :  { %1580 = vmatmul.mubr.bf16.vlgmr.msra.gmra.mrb[12].mxu0 %v3689_v46  ;;  %1620 = vmatmul.mubr.bf16.vlgmr.msra.gmra.mrb[12].mxu1 %v3691_v51 }
 0x120   :  { %1855 = vmatpush1.bf16.msra.mxu0 %v4948_v52  ;;  %1896 = vmatpush1.bf16.msra.mxu1 %v4950_v53 }
 0x121   :  { %1856 = vmatprep.subr.bf16.mxu0 %v4956_v54  ;;  %1897 = vmatprep.subr.bf16.mxu1 %v4958_v55 }
 0x122   :  { %1886 = vmatprep.mubr.bf16.mxu0 %v5297_v12  ;;  %1927 = vmatprep.mubr.bf16.mxu1 %v5297_v12 }
 0x124   :  { %1857 = vmatpush1.bf16.msra.mxu0 %v4960_v56  ;;  %1898 = vmatpush1.bf16.msra.mxu1 %v4962_v57 }
 0x125   :  { %1858 = vmatprep.subr.bf16.mxu0 %v4968_v58  ;;  %1899 = vmatprep.subr.bf16.mxu1 %v4970_v59 }
 0x128   :  { %1859 = vmatpush1.bf16.msra.mxu0 %v4972_v60  ;;  %1900 = vmatpush1.bf16.msra.mxu1 %v4974_v61 }
 0x129   :  { %1860 = vmatprep.subr.bf16.mxu0 %v4980_v62  ;;  %1901 = vmatprep.subr.bf16.mxu1 %v4982_v63 }
 0x12c   :  { %1861 = vmatpush1.bf16.msra.mxu0 %v4984_v0  ;;  %1902 = vmatpush1.bf16.msra.mxu1 %v4986_v1 }
 0x12d   :  { %1862 = vmatprep.subr.bf16.mxu0 %v4992_v2  ;;  %1903 = vmatprep.subr.bf16.mxu1 %v4994_v3 }
 0x130   :  { %1863 = vmatpush1.bf16.msra.mxu0 %v4996_v4  ;;  %1904 = vmatpush1.bf16.msra.mxu1 %v4998_v5 }
 0x131   :  { %1864 = vmatprep.subr.bf16.mxu0 %v5002_v6  ;;  %1905 = vmatprep.subr.bf16.mxu1 %v5004_v7 }
 0x134   :  { %1865 = vmatpush1.bf16.msra.mxu0 %v5008_v8  ;;  %1906 = vmatpush1.bf16.msra.mxu1 %v5010_v9 }
 0x135   :  { %1866 = vmatprep.subr.bf16.mxu0 %v5014_v10  ;;  %1907 = vmatprep.subr.bf16.mxu1 %v5016_v11 }
 0x138   :  { %1867 = vmatpush1.bf16.msra.mxu0 %v5022_v13  ;;  %1908 = vmatpush1.bf16.msra.mxu1 %v5024_v14 }
 0x139   :  { %1868 = vmatprep.subr.bf16.mxu0 %v5028_v15  ;;  %1909 = vmatprep.subr.bf16.mxu1 %v5030_v16 }
 0x13c   :  { %1869 = vmatpush1.bf16.msra.mxu0 %v5034_v17  ;;  %1910 = vmatpush1.bf16.msra.mxu1 %v5036_v18 }
 0x13d   :  { %2172 = vmatprep.subr.bf16.mxu0 %v4944_v49  ;;  %2213 = vmatprep.subr.bf16.mxu1 %v4946_v50 }
 0x1d1   :  { %v1089_v28 = vpop.f32.mrb[0].mxu0  ;;  %v1215_v29 = vpop.f32.mrb[0].mxu1 }
 0x1d2   :  { %v4052_v30 = vadd.f32 %v1089_v28, %v275_v24  ;;  %v1091_v32 = vpop.f32.mrb[1].mxu0  ;;  %v1217_v33 = vpop.f32.mrb[1].mxu1 }
 0x1d3   :  { %v4053_v34 = vadd.f32 %v1091_v32, %v5047_v26  ;;  %v1093_v36 = vpop.f32.mrb[2].mxu0  ;;  %v1219_v37 = vpop.f32.mrb[2].mxu1  ;;  %v4065_v46 = vadd.f32 %v1217_v33, %v287_v35 }
 0x1d4   :  { %v3725_v38 = vmul.f32 -1.442695, %v4052_v30  ;;  %v5050_v39 = vadd.f32 %v1093_v36, %v275_v24  ;;  %v5052_v40 = vadd.f32 %v1219_v37, %v283_v31  ;;  %v1095_v41 = vpop.f32.mrb[3].mxu0  ;;  %v1221_v42 = vpop.f32.mrb[3].mxu1 }
 0x1d5   :  { %v3726_v43 = vmul.f32 -1.442695, %v4053_v34  ;;  %v5055_v44 = vadd.f32 %v1095_v41, %v5047_v26  ;;  %v5057_v45 = vadd.f32 %v1221_v42, %v287_v35  ;;  %v3727_v34 = vmul.f32 -1.442695, %v4065_v46 }
 0x1d6   :  { %4476 = vpow2.f32 %v3725_v38  ;;  %v4064_v38 = vadd.f32 %v1215_v29, %v283_v31 }
 0x1d7   :  { %4478 = vpow2.f32 %v3726_v43 }
 0x1d8   :  { %4480 = vpow2.f32 %v3727_v34 }
 0x1d9   :  { %v1099_v47 = vpop.f32.mrb[4].mxu0  ;;  %v1225_v48 = vpop.f32.mrb[4].mxu1  ;;  %4482 = vtanh.f32 %v4064_v38 }
 0x1da   :  { %v5059_v51 = vadd.f32 %v1099_v47, %v275_v24  ;;  %v5061_v19 = vadd.f32 %v1225_v48, %v283_v31  ;;  %v1101_v20 = vpop.f32.mrb[5].mxu0  ;;  %v1227_v21 = vpop.f32.mrb[5].mxu1 }
 0x1db   :  { %v5064_v22 = vadd.f32 %v1101_v20, %v5047_v26  ;;  %v5066_v23 = vadd.f32 %v1227_v21, %v287_v35  ;;  %v1103_v25 = vpop.f32.mrb[6].mxu0  ;;  %v1229_v27 = vpop.f32.mrb[6].mxu1 }
 0x1dc   :  { %v5068_v28 = vadd.f32 %v1103_v25, %v275_v24  ;;  %v5070_v30 = vadd.f32 %v1229_v27, %v283_v31  ;;  %v1105_v32 = vpop.f32.mrb[7].mxu0  ;;  %v1231_v33 = vpop.f32.mrb[7].mxu1 }
 0x1dd   :  { %v5073_v36 = vadd.f32 %v1105_v32, %v5047_v26  ;;  %v5075_v37 = vadd.f32 %v1231_v33, %v287_v35 }
 0x1df   :  { %5299 = vst [vmem:[#allocation22_spill] sm:$0xff] %v5075_v37 }
 0x1e0   :  { %v4477_v41 = vpop.eup %4476 }
 0x1e1   :  { %v4479_v42 = vpop.eup %4478  ;;  %v1631_v43 = vadd.f32 1.0, %v4477_v41  ;;  %v1109_v47 = vpop.f32.mrb[8].mxu0 }
 0x1e2   :  { %v1235_v48 = vpop.f32.mrb[8].mxu1  ;;  %v1638_v20 = vadd.f32 1.0, %v4479_v42  ;;  %v5077_v21 = vadd.f32 %v1109_v47, %v275_v24  ;;  %v1111_v27 = vpop.f32.mrb[9].mxu0 }
 0x1e3   :  { %v5079_v25 = vadd.f32 %v1235_v48, %v283_v31  ;;  %v1237_v46 = vpop.f32.mrb[9].mxu1  ;;  %4484 = vrcp.f32 %v1631_v43  ;;  %v5082_v32 = vadd.f32 %v1111_v27, %v5047_v26  ;;  %v1113_v29 = vpop.f32.mrb[10].mxu0 }
 0x1e4   :  { %5300 = vst [vmem:[#allocation23_spill] sm:$0xff] %v5077_v21  ;;  %v5084_v33 = vadd.f32 %v1237_v46, %v287_v35  ;;  %v1239_v12 = vpop.f32.mrb[10].mxu1  ;;  %4486 = vrcp.f32 %v1638_v20  ;;  %v5086_v34 = vadd.f32 %v1113_v29, %v275_v24  ;;  %v1115_v38 = vpop.f32.mrb[11].mxu0 }
 0x1e5   :  { %5301 = vst [vmem:[#allocation24_spill] sm:$0xff] %v5079_v25  ;;  %5302 = vst [vmem:[#allocation25_spill] sm:$0xff] %v5082_v32  ;;  %v5088_v41 = vadd.f32 %v1239_v12, %v283_v31  ;;  %v1241_v42 = vpop.f32.mrb[11].mxu1  ;;  %v5091_v47 = vadd.f32 %v1115_v38, %v5047_v26  ;;  %v4481_v43 = vpop.eup %4480  ;;  %v5308_v26 = vmov 0  }
 0x1e6   :  { %5303 = vst [vmem:[#allocation26_spill] sm:$0xff] %v5084_v33  ;;  %5304 = vst [vmem:[#allocation27_spill] sm:$0xff] %v5086_v34  ;;  %v5093_v48 = vadd.f32 %v1241_v42, %v287_v35  ;;  %v4483_v25 = vpop.eup %4482  ;;  %v1647_v33 = vadd.f32 1.0, %v4481_v43 }
 0x1e7   :  { %5305 = vst [vmem:[#allocation28_spill] sm:$0xff] %v5088_v41  ;;  %5306 = vst [vmem:[#allocation29_spill] sm:$0xff] %v5091_v47 }
 0x1e8   :  { %5307 = vst [vmem:[#allocation30_spill] sm:$0xff] %v5093_v48  ;;  %4488 = vrcp.f32 %v1647_v33 }
 0x1ed   :  { %v4485_v27 = vpop.eup %4484 }
 0x1ee   :  { %v4487_v32 = vpop.eup %4486  ;;  %v1651_v46 = vmul.f32 %v4485_v27, %v4483_v25 }
 0x1ef   :  { %v1650_v21 = vmul.f32 0.0, %v4487_v32 }
 0x1f1   :  { %v5095_v37 = vadd.f32 %v1651_v46, %v1650_v21  ;;  %v3688_v21 = vld [vmem:[%s5289_s3] ss:$0 sm:$0xff] }
 0x1f2   :  { %v4489_v12 = vpop.eup %4488  ;;  %v3956_v35 = vpop.f32.mrb[12].mxu0 }
 0x1f3   :  { %4490 = vtanh.f32 %v5095_v37  ;;  %v3957_v25 = vpop.f32.mrb[13].mxu0  ;;  %v3978_v38 = vpop.f32.mrb[12].mxu1 }
 0x1f4   :  { %v3958_v32 = vadd.f32 %v3957_v25, %v3956_v35  ;;  %v3959_v33 = vpop.f32.mrb[14].mxu0  ;;  %v3979_v43 = vpop.f32.mrb[13].mxu1 }
 0x1f5   :  { %v3960_v29 = vpop.f32.mrb[15].mxu0  ;;  %v3980_v27 = vadd.f32 %v3979_v43, %v3978_v38  ;;  %v3981_v46 = vpop.f32.mrb[14].mxu1 }
 0x1f6   :  { %v1582_v42 = vadd.f32 %v3958_v32, %v3688_v21 }
 0x1fd   :  { %v4491_v24 = vpop.eup %4490 }
 0x1fe   :  { %v1654_v31 = vmul.f32 %v4491_v24, %v4489_v12  ;;  %v3982_v12 = vpop.f32.mrb[15].mxu1  ;;  %v5135_v24 = vadd.f32 %v3980_v27, %v1582_v42 }
 0x200   :  { %v1655_v20 = vpack.c.bf16 %v1654_v31, %v1654_v31 }
 0x202   :  { %1656 = vst [vmem:[#allocation3] sm:$0xf] %v1655_v20  ;;  %1887 = vmatmul.mubr.bf16.vlgmr.msra.gmra.mrb[16].mxu0 %v1655_v20  ;;  %1928 = vmatmul.mubr.bf16.vlgmr.msra.gmra.mrb[16].mxu1 %v1655_v20 }
 0x203   :  { %2173 = vmatpush1.bf16.msra.mxu0 %v4948_v52  ;;  %2214 = vmatpush1.bf16.msra.mxu1 %v4950_v53 }
 0x204   :  { %2174 = vmatprep.subr.bf16.mxu0 %v4956_v54  ;;  %2215 = vmatprep.subr.bf16.mxu1 %v4958_v55 }
 0x205   :  { %2204 = vmatprep.mubr.bf16.mxu0 %v5308_v26  ;;  %2245 = vmatprep.mubr.bf16.mxu1 %v5308_v26 }
 0x207   :  { %2175 = vmatpush1.bf16.msra.mxu0 %v4960_v56  ;;  %2216 = vmatpush1.bf16.msra.mxu1 %v4962_v57 }
 0x208   :  { %2176 = vmatprep.subr.bf16.mxu0 %v4968_v58  ;;  %2217 = vmatprep.subr.bf16.mxu1 %v4970_v59 }
 0x20b   :  { %2177 = vmatpush1.bf16.msra.mxu0 %v4972_v60  ;;  %2218 = vmatpush1.bf16.msra.mxu1 %v4974_v61 }
 0x20c   :  { %2178 = vmatprep.subr.bf16.mxu0 %v4980_v62  ;;  %2219 = vmatprep.subr.bf16.mxu1 %v4982_v63 }
 0x20f   :  { %2179 = vmatpush1.bf16.msra.mxu0 %v4984_v0  ;;  %2220 = vmatpush1.bf16.msra.mxu1 %v4986_v1 }
 0x210   :  { %2180 = vmatprep.subr.bf16.mxu0 %v4992_v2  ;;  %2221 = vmatprep.subr.bf16.mxu1 %v4994_v3 }
 0x213   :  { %2181 = vmatpush1.bf16.msra.mxu0 %v4996_v4  ;;  %2222 = vmatpush1.bf16.msra.mxu1 %v4998_v5 }
 0x214   :  { %2182 = vmatprep.subr.bf16.mxu0 %v5002_v6  ;;  %2223 = vmatprep.subr.bf16.mxu1 %v5004_v7 }
 0x217   :  { %2183 = vmatpush1.bf16.msra.mxu0 %v5008_v8  ;;  %2224 = vmatpush1.bf16.msra.mxu1 %v5010_v9 }
 0x218   :  { %2184 = vmatprep.subr.bf16.mxu0 %v5014_v10  ;;  %2225 = vmatprep.subr.bf16.mxu1 %v5016_v11 }
 0x21b   :  { %2185 = vmatpush1.bf16.msra.mxu0 %v5022_v13  ;;  %2226 = vmatpush1.bf16.msra.mxu1 %v5024_v14 }
 0x21c   :  { %2186 = vmatprep.subr.bf16.mxu0 %v5028_v15  ;;  %2227 = vmatprep.subr.bf16.mxu1 %v5030_v16 }
 0x21f   :  { %2187 = vmatpush1.bf16.msra.mxu0 %v5034_v17  ;;  %2228 = vmatpush1.bf16.msra.mxu1 %v5036_v18 }
 0x220   :  { %2490 = vmatprep.subr.bf16.mxu0 %v4944_v49  ;;  %2531 = vmatprep.subr.bf16.mxu1 %v4946_v50 }
 0x2d5   :  { %v1888_v31 = vpop.f32.mrb[16].mxu0  ;;  %v1929_v20 = vpop.f32.mrb[16].mxu1 }
 0x2d6   :  { %v1936_v48 = vadd.f32 %v5050_v39, %v1888_v31  ;;  %v1938_v47 = vadd.f32 %v5052_v40, %v1929_v20  ;;  %v1890_v41 = vpop.f32.mrb[17].mxu0  ;;  %v1931_v34 = vpop.f32.mrb[17].mxu1 }
 0x2d7   :  { %v1937_v35 = vadd.f32 %v5055_v44, %v1890_v41  ;;  %v1939_v25 = vadd.f32 %v5057_v45, %v1931_v34  ;;  %v1892_v33 = vpop.f32.mrb[18].mxu0  ;;  %v1933_v21 = vpop.f32.mrb[18].mxu1 }
 0x2d8   :  { %v3760_v32 = vmul.f32 -1.442695, %v1936_v48  ;;  %v1893_v29 = vpop.f32.mrb[19].mxu0  ;;  %v1934_v38 = vpop.f32.mrb[19].mxu1 }
 0x2d9   :  { %v3761_v43 = vmul.f32 -1.442695, %v1937_v35  ;;  %v3762_v42 = vmul.f32 -1.442695, %v1939_v25 }
 0x2da   :  { %4492 = vpow2.f32 %v3760_v32 }
 0x2db   :  { %4494 = vpow2.f32 %v3761_v43 }
 0x2dc   :  { %4496 = vpow2.f32 %v3762_v42 }
 0x2dd   :  { %4498 = vtanh.f32 %v1938_v47 }
 0x2e4   :  { %v4493_v27 = vpop.eup %4492 }
 0x2e5   :  { %v4495_v46 = vpop.eup %4494  ;;  %v1948_v39 = vadd.f32 1.0, %v4493_v27 }
 0x2e6   :  { %v1955_v40 = vadd.f32 1.0, %v4495_v46  ;;  %v4497_v44 = vpop.eup %4496 }
 0x2e7   :  { %4500 = vrcp.f32 %v1948_v39  ;;  %v4499_v41 = vpop.eup %4498  ;;  %v1964_v48 = vadd.f32 1.0, %v4497_v44 }
 0x2e8   :  { %4502 = vrcp.f32 %v1955_v40 }
 0x2e9   :  { %4504 = vrcp.f32 %v1964_v48 }
 0x2f1   :  { %v4501_v45 = vpop.eup %4500 }
 0x2f2   :  { %v4503_v34 = vpop.eup %4502  ;;  %v1968_v12 = vmul.f32 %v4501_v45, %v4499_v41 }
 0x2f3   :  { %v1967_v31 = vmul.f32 %v4503_v34, %v5095_v37  ;;  %v4505_v35 = vpop.eup %4504 }
 0x2f5   :  { %v5142_v20 = vadd.f32 %v1968_v12, %v1967_v31 }
 0x2f7   :  { %4506 = vtanh.f32 %v5142_v20 }
 0x301   :  { %v4507_v25 = vpop.eup %4506 }
 0x302   :  { %v1971_v33 = vmul.f32 %v4507_v25, %v4505_v35 }
 0x304   :  { %v1972_v47 = vpack.c.bf16 %v1971_v33, %v1971_v33 }
 0x306   :  { %1974 = vst [vmem:[#allocation3 + $0x4] sm:$0xf] %v1972_v47  ;;  %2205 = vmatmul.mubr.bf16.vlgmr.msra.gmra.mrb[20].mxu0 %v1972_v47  ;;  %2246 = vmatmul.mubr.bf16.vlgmr.msra.gmra.mrb[20].mxu1 %v1972_v47 }
 0x307   :  { %2491 = vmatpush1.bf16.msra.mxu0 %v4948_v52  ;;  %2532 = vmatpush1.bf16.msra.mxu1 %v4950_v53 }
 0x308   :  { %2492 = vmatprep.subr.bf16.mxu0 %v4956_v54  ;;  %2533 = vmatprep.subr.bf16.mxu1 %v4958_v55 }
 0x309   :  { %2522 = vmatprep.mubr.bf16.mxu0 %v5308_v26  ;;  %2563 = vmatprep.mubr.bf16.mxu1 %v5308_v26 }
 0x30b   :  { %2493 = vmatpush1.bf16.msra.mxu0 %v4960_v56  ;;  %2534 = vmatpush1.bf16.msra.mxu1 %v4962_v57 }
 0x30c   :  { %2494 = vmatprep.subr.bf16.mxu0 %v4968_v58  ;;  %2535 = vmatprep.subr.bf16.mxu1 %v4970_v59 }
 0x30f   :  { %2495 = vmatpush1.bf16.msra.mxu0 %v4972_v60  ;;  %2536 = vmatpush1.bf16.msra.mxu1 %v4974_v61 }
 0x310   :  { %2496 = vmatprep.subr.bf16.mxu0 %v4980_v62  ;;  %2537 = vmatprep.subr.bf16.mxu1 %v4982_v63 }
 0x313   :  { %2497 = vmatpush1.bf16.msra.mxu0 %v4984_v0  ;;  %2538 = vmatpush1.bf16.msra.mxu1 %v4986_v1 }
 0x314   :  { %2498 = vmatprep.subr.bf16.mxu0 %v4992_v2  ;;  %2539 = vmatprep.subr.bf16.mxu1 %v4994_v3 }
 0x317   :  { %2499 = vmatpush1.bf16.msra.mxu0 %v4996_v4  ;;  %2540 = vmatpush1.bf16.msra.mxu1 %v4998_v5 }
 0x318   :  { %2500 = vmatprep.subr.bf16.mxu0 %v5002_v6  ;;  %2541 = vmatprep.subr.bf16.mxu1 %v5004_v7 }
 0x31b   :  { %2501 = vmatpush1.bf16.msra.mxu0 %v5008_v8  ;;  %2542 = vmatpush1.bf16.msra.mxu1 %v5010_v9 }
 0x31c   :  { %2502 = vmatprep.subr.bf16.mxu0 %v5014_v10  ;;  %2543 = vmatprep.subr.bf16.mxu1 %v5016_v11 }
 0x31f   :  { %2503 = vmatpush1.bf16.msra.mxu0 %v5022_v13  ;;  %2544 = vmatpush1.bf16.msra.mxu1 %v5024_v14 }
 0x320   :  { %2504 = vmatprep.subr.bf16.mxu0 %v5028_v15  ;;  %2545 = vmatprep.subr.bf16.mxu1 %v5030_v16 }
 0x323   :  { %2505 = vmatpush1.bf16.msra.mxu0 %v5034_v17  ;;  %2546 = vmatpush1.bf16.msra.mxu1 %v5036_v18 }
 0x324   :  { %2808 = vmatprep.subr.bf16.mxu0 %v4944_v49  ;;  %2849 = vmatprep.subr.bf16.mxu1 %v4946_v50 }
 0x3d9   :  { %v2206_v37 = vpop.f32.mrb[20].mxu0  ;;  %v2247_v21 = vpop.f32.mrb[20].mxu1 }
 0x3da   :  { %v2254_v32 = vadd.f32 %v5059_v51, %v2206_v37  ;;  %v2256_v29 = vadd.f32 %v5061_v19, %v2247_v21  ;;  %v2208_v38 = vpop.f32.mrb[21].mxu0  ;;  %v2249_v43 = vpop.f32.mrb[21].mxu1 }
 0x3db   :  { %v2255_v42 = vadd.f32 %v5064_v22, %v2208_v38  ;;  %v2257_v27 = vadd.f32 %v5066_v23, %v2249_v43  ;;  %v2210_v46 = vpop.f32.mrb[22].mxu0  ;;  %v2251_v39 = vpop.f32.mrb[22].mxu1  ;;  %v4412_v38 = vld [vmem:[#allocation12 + $0x8] ss:$16 sps:$4 sm:$0xff]   ;;  %v4417_v43 = vld [vmem:[#allocation12 + $0x24] ss:$16 sps:$4 sm:$0xff]  }
 0x3dc   :  { %v3795_v40 = vmul.f32 -1.442695, %v2254_v32  ;;  %v2211_v44 = vpop.f32.mrb[23].mxu0  ;;  %v2252_v41 = vpop.f32.mrb[23].mxu1  ;;  %v4418_v46 = vld [vmem:[#allocation12 + $0x28] ss:$16 sps:$4 sm:$0xff]  }
 0x3dd   :  { %v3796_v49 = vmul.f32 -1.442695, %v2255_v42  ;;  %v3797_v50 = vmul.f32 -1.442695, %v2257_v27  ;;  %v4420_v42 = vld [vmem:[#allocation12 + $0x2c] ss:$16 sps:$4 sm:$0xff]  }
 0x3de   :  { %4508 = vpow2.f32 %v3795_v40  ;;  %v4415_v27 = vld [vmem:[#allocation12 + $0x20] ss:$16 sps:$4 sm:$0xff]   ;;  %v4423_v39 = vld [vmem:[#allocation12 + $0x44] ss:$16 sps:$4 sm:$0xff]   ;;  %v4426_v40 = vld [vmem:[#allocation12 + $0x4c] ss:$16 sps:$4 sm:$0xff]  }
 0x3df   :  { %4510 = vpow2.f32 %v3796_v49  ;;  %v4421_v44 = vld [vmem:[#allocation12 + $0x40] ss:$16 sps:$4 sm:$0xff]   ;;  %v4429_v41 = vld [vmem:[#allocation12 + $0x64] ss:$16 sps:$4 sm:$0xff]   ;;  %v4432_v49 = vld [vmem:[#allocation12 + $0x6c] ss:$16 sps:$4 sm:$0xff]  }
 0x3e0   :  { %4512 = vpow2.f32 %v3797_v50  ;;  %v4427_v50 = vld [vmem:[#allocation12 + $0x60] ss:$16 sps:$4 sm:$0xff]  }
 0x3e1   :  { %4514 = vtanh.f32 %v2256_v29  ;;  %v4409_v29 = vld [vmem:[#allocation12] ss:$16 sps:$4 sm:$0xff]  }
 0x3e8   :  { %v4509_v45 = vpop.eup %4508 }
 0x3e9   :  { %v4511_v34 = vpop.eup %4510  ;;  %v2266_v51 = vadd.f32 1.0, %v4509_v45  ;;  %v4430_v45 = vld [vmem:[#allocation12 + $0x68] ss:$16 sps:$4 sm:$0xff]  }
 0x3ea   :  { %v2273_v19 = vadd.f32 1.0, %v4511_v34  ;;  %v4513_v22 = vpop.eup %4512  ;;  %v4435_v34 = vld [vmem:[#allocation12 + $0x84] ss:$16 sps:$4 sm:$0xff]  }
 0x3eb   :  { %4516 = vrcp.f32 %v2266_v51  ;;  %v4515_v12 = vpop.eup %4514  ;;  %v2282_v35 = vadd.f32 1.0, %v4513_v22  ;;  %v4438_v51 = vld [vmem:[#allocation12 + $0x8c] ss:$16 sps:$4 sm:$0xff]   ;;  %v4436_v22 = vld [vmem:[#allocation12 + $0x88] ss:$16 sps:$4 sm:$0xff]  }
 0x3ec   :  { %4518 = vrcp.f32 %v2273_v19  ;;  %v4433_v19 = vld [vmem:[#allocation12 + $0x80] ss:$16 sps:$4 sm:$0xff]  }
 0x3ed   :  { %4520 = vrcp.f32 %v2282_v35  ;;  %v4447_v35 = vld [vmem:[#allocation12 + $0xc4] ss:$16 sps:$4 sm:$0xff]  }
 0x3f5   :  { %v4517_v23 = vpop.eup %4516 }
 0x3f6   :  { %v4519_v48 = vpop.eup %4518  ;;  %v2286_v31 = vmul.f32 %v4517_v23, %v4515_v12  ;;  %v4441_v12 = vld [vmem:[#allocation12 + $0xa4] ss:$16 sps:$4 sm:$0xff]   ;;  %v4444_v23 = vld [vmem:[#allocation12 + $0xac] ss:$16 sps:$4 sm:$0xff]  }
 0x3f7   :  { %v2285_v25 = vmul.f32 %v4519_v48, %v5142_v20  ;;  %v4521_v47 = vpop.eup %4520  ;;  %v4414_v20 = vld [vmem:[#allocation12 + $0xc] ss:$16 sps:$4 sm:$0xff]   ;;  %v4439_v48 = vld [vmem:[#allocation12 + $0xa0] ss:$16 sps:$4 sm:$0xff]  }
 0x3f9   :  { %v5184_v33 = vadd.f32 %v2286_v31, %v2285_v25  ;;  %v4442_v31 = vld [vmem:[#allocation12 + $0xa8] ss:$16 sps:$4 sm:$0xff]   ;;  %v4450_v25 = vld [vmem:[#allocation12 + $0xcc] ss:$16 sps:$4 sm:$0xff]  }
 0x3fb   :  { %4522 = vtanh.f32 %v5184_v33 }
 0x405   :  { %v4523_v37 = vpop.eup %4522 }
 0x406   :  { %v2289_v21 = vmul.f32 %v4523_v37, %v4521_v47  ;;  %v4448_v47 = vld [vmem:[#allocation12 + $0xc8] ss:$16 sps:$4 sm:$0xff]   ;;  %v4453_v37 = vld [vmem:[#allocation12 + $0xe4] ss:$16 sps:$4 sm:$0xff]  }
 0x408   :  { %v2290_v32 = vpack.c.bf16 %v2289_v21, %v2289_v21  ;;  %v4456_v21 = vld [vmem:[#allocation12 + $0xec] ss:$16 sps:$4 sm:$0xff]  }
 0x40a   :  { %2292 = vst [vmem:[#allocation3 + $0x8] sm:$0xf] %v2290_v32  ;;  %2523 = vmatmul.mubr.bf16.vlgmr.msra.gmra.mrb[24].mxu0 %v2290_v32  ;;  %2564 = vmatmul.mubr.bf16.vlgmr.msra.gmra.mrb[24].mxu1 %v2290_v32  ;;  %v4451_v32 = vld [vmem:[#allocation12 + $0xe0] ss:$16 sps:$4 sm:$0xff]  }
 0x40b   :  { %2809 = vmatpush1.bf16.msra.mxu0 %v4948_v52  ;;  %2850 = vmatpush1.bf16.msra.mxu1 %v4950_v53 }
 0x40c   :  { %2810 = vmatprep.subr.bf16.mxu0 %v4956_v54  ;;  %2851 = vmatprep.subr.bf16.mxu1 %v4958_v55 }
 0x40d   :  { %2840 = vmatprep.mubr.bf16.mxu0 %v5308_v26  ;;  %2881 = vmatprep.mubr.bf16.mxu1 %v5308_v26 }
 0x40f   :  { %2811 = vmatpush1.bf16.msra.mxu0 %v4960_v56  ;;  %2852 = vmatpush1.bf16.msra.mxu1 %v4962_v57 }
 0x410   :  { %2812 = vmatprep.subr.bf16.mxu0 %v4968_v58  ;;  %2853 = vmatprep.subr.bf16.mxu1 %v4970_v59  ;;  %v5309_v59 = vld [vmem:[#allocation22_spill] sm:$0xff] }
 0x413   :  { %2813 = vmatpush1.bf16.msra.mxu0 %v4972_v60  ;;  %2854 = vmatpush1.bf16.msra.mxu1 %v4974_v61 }
 0x414   :  { %2814 = vmatprep.subr.bf16.mxu0 %v4980_v62  ;;  %2855 = vmatprep.subr.bf16.mxu1 %v4982_v63 }
 0x417   :  { %2815 = vmatpush1.bf16.msra.mxu0 %v4984_v0  ;;  %2856 = vmatpush1.bf16.msra.mxu1 %v4986_v1 }
 0x418   :  { %2816 = vmatprep.subr.bf16.mxu0 %v4992_v2  ;;  %2857 = vmatprep.subr.bf16.mxu1 %v4994_v3 }
 0x41b   :  { %2817 = vmatpush1.bf16.msra.mxu0 %v4996_v4  ;;  %2858 = vmatpush1.bf16.msra.mxu1 %v4998_v5 }
 0x41c   :  { %2818 = vmatprep.subr.bf16.mxu0 %v5002_v6  ;;  %2859 = vmatprep.subr.bf16.mxu1 %v5004_v7 }
 0x41f   :  { %2819 = vmatpush1.bf16.msra.mxu0 %v5008_v8  ;;  %2860 = vmatpush1.bf16.msra.mxu1 %v5010_v9 }
 0x420   :  { %2820 = vmatprep.subr.bf16.mxu0 %v5014_v10  ;;  %2861 = vmatprep.subr.bf16.mxu1 %v5016_v11 }
 0x423   :  { %2821 = vmatpush1.bf16.msra.mxu0 %v5022_v13  ;;  %2862 = vmatpush1.bf16.msra.mxu1 %v5024_v14 }
 0x424   :  { %2822 = vmatprep.subr.bf16.mxu0 %v5028_v15  ;;  %2863 = vmatprep.subr.bf16.mxu1 %v5030_v16 }
 0x427   :  { %2823 = vmatpush1.bf16.msra.mxu0 %v5034_v17  ;;  %2864 = vmatpush1.bf16.msra.mxu1 %v5036_v18 }
 0x428   :  { %3167 = vmatprep.subr.bf16.mxu1 %v4414_v20 }
 0x4dd   :  { %v2524_v52 = vpop.f32.mrb[24].mxu0  ;;  %v2565_v53 = vpop.f32.mrb[24].mxu1 }
 0x4de   :  { %v2572_v54 = vadd.f32 %v5068_v28, %v2524_v52  ;;  %v2574_v55 = vadd.f32 %v5070_v30, %v2565_v53  ;;  %v2526_v56 = vpop.f32.mrb[25].mxu0  ;;  %v2567_v57 = vpop.f32.mrb[25].mxu1  ;;  %v4454_v52 = vld [vmem:[#allocation12 + $0xe8] ss:$16 sps:$4 sm:$0xff]   ;;  %v4770_v53 = vmov 0.0  }
 0x4df   :  { %v2573_v58 = vadd.f32 %v5073_v36, %v2526_v56  ;;  %v2575_v60 = vadd.f32 %v5309_v59, %v2567_v57  ;;  %v2528_v61 = vpop.f32.mrb[26].mxu0  ;;  %v2569_v62 = vpop.f32.mrb[26].mxu1  ;;  %v4411_v36 = vld [vmem:[#allocation12 + $0x4] ss:$16 sps:$4 sm:$0xff]  }
 0x4e0   :  { %v3830_v63 = vmul.f32 -1.442695, %v2572_v54  ;;  %v2529_v0 = vpop.f32.mrb[27].mxu0  ;;  %v2570_v1 = vpop.f32.mrb[27].mxu1  ;;  %3126 = vmatprep.subr.bf16.mxu0 %v4411_v36  ;;  %v5310_v56 = vld [vmem:[#allocation23_spill] sm:$0xff]  ;;  %v5312_v62 = vld [vmem:[#allocation25_spill] sm:$0xff] }
 0x4e1   :  { %v3831_v2 = vmul.f32 -1.442695, %v2573_v58  ;;  %v3832_v3 = vmul.f32 -1.442695, %v2575_v60  ;;  %v5311_v58 = vld [vmem:[#allocation24_spill] sm:$0xff]  ;;  %v5313_v0 = vld [vmem:[#allocation26_spill] sm:$0xff] }
 0x4e2   :  { %4524 = vpow2.f32 %v3830_v63 }
 0x4e3   :  { %4526 = vpow2.f32 %v3831_v2 }
 0x4e4   :  { %4528 = vpow2.f32 %v3832_v3 }
 0x4e5   :  { %4530 = vtanh.f32 %v2574_v55 }
 0x4ec   :  { %v4525_v4 = vpop.eup %4524 }
 0x4ed   :  { %v4527_v5 = vpop.eup %4526  ;;  %v2584_v6 = vadd.f32 1.0, %v4525_v4 }
 0x4ee   :  { %v2591_v7 = vadd.f32 1.0, %v4527_v5  ;;  %v4529_v8 = vpop.eup %4528 }
 0x4ef   :  { %4532 = vrcp.f32 %v2584_v6  ;;  %v4531_v9 = vpop.eup %4530  ;;  %v2600_v14 = vadd.f32 1.0, %v4529_v8 }
 0x4f0   :  { %4534 = vrcp.f32 %v2591_v7 }
 0x4f1   :  { %4536 = vrcp.f32 %v2600_v14 }
 0x4f9   :  { %v4533_v10 = vpop.eup %4532 }
 0x4fa   :  { %v4535_v11 = vpop.eup %4534  ;;  %v2604_v13 = vmul.f32 %v4533_v10, %v4531_v9 }
 0x4fb   :  { %v2603_v15 = vmul.f32 %v4535_v11, %v5184_v33  ;;  %v4537_v17 = vpop.eup %4536  ;;  %v4445_v33 = vld [vmem:[#allocation12 + $0xc0] ss:$16 sps:$4 sm:$0xff]  }
 0x4fd   :  { %v5224_v16 = vadd.f32 %v2604_v13, %v2603_v15 }
 0x4ff   :  { %4538 = vtanh.f32 %v5224_v16 }
 0x509   :  { %v4539_v18 = vpop.eup %4538 }
 0x50a   :  { %v2607_v28 = vmul.f32 %v4539_v18, %v4537_v17 }
 0x50c   :  { %v2608_v30 = vpack.c.bf16 %v2607_v28, %v2607_v28 }
 0x50e   :  { %2610 = vst [vmem:[#allocation3 + $0xc] sm:$0xf] %v2608_v30  ;;  %2841 = vmatmul.mubr.bf16.vlgmr.msra.gmra.mrb[28].mxu0 %v2608_v30  ;;  %2882 = vmatmul.mubr.bf16.vlgmr.msra.gmra.mrb[28].mxu1 %v2608_v30 }
 0x50f   :  { %3158 = vmatprep.mubr.bf16.mxu0 %v5308_v26  ;;  %3199 = vmatprep.mubr.bf16.mxu1 %v5308_v26  ;;  %v4424_v26 = vld [vmem:[#allocation12 + $0x48] ss:$16 sps:$4 sm:$0xff]  }
 0x510   :  { %3127 = vmatpush1.bf16.msra.mxu0 %v4409_v29  ;;  %3168 = vmatpush1.bf16.msra.mxu1 %v4412_v38 }
 0x511   :  { %3128 = vmatprep.subr.bf16.mxu0 %v4417_v43  ;;  %3169 = vmatprep.subr.bf16.mxu1 %v4420_v42  ;;  %v4457_v42 = vld [vmem:[#allocation15] sm:$0xff]  }
 0x514   :  { %3129 = vmatpush1.bf16.msra.mxu0 %v4415_v27  ;;  %3170 = vmatpush1.bf16.msra.mxu1 %v4418_v46  ;;  %v4458_v27 = vld [vmem:[#allocation13] sm:$0xff]  }
 0x515   :  { %3130 = vmatprep.subr.bf16.mxu0 %v4423_v39  ;;  %3171 = vmatprep.subr.bf16.mxu1 %v4426_v40  ;;  %v4459_v39 = vld [vmem:[#allocation15 + $0x8] sm:$0xff]  }
 0x516   :  { %v4460_v40 = vld [vmem:[#allocation13 + $0x8] sm:$0xff]  }
 0x518   :  { %3131 = vmatpush1.bf16.msra.mxu0 %v4421_v44  ;;  %3172 = vmatpush1.bf16.msra.mxu1 %v4424_v26  ;;  %v4462_v44 = vld [vmem:[#allocation13 + $0x10] sm:$0xff]   ;;  %v4463_v26 = vld [vmem:[#allocation15 + $0x18] sm:$0xff]  }
 0x519   :  { %3132 = vmatprep.subr.bf16.mxu0 %v4429_v41  ;;  %3173 = vmatprep.subr.bf16.mxu1 %v4432_v49  ;;  %v4464_v41 = vld [vmem:[#allocation13 + $0x18] sm:$0xff]   ;;  %v4465_v49 = vld [vmem:[#allocation15 + $0x20] sm:$0xff]  }
 0x51c   :  { %3133 = vmatpush1.bf16.msra.mxu0 %v4427_v50  ;;  %3174 = vmatpush1.bf16.msra.mxu1 %v4430_v45  ;;  %v4466_v50 = vld [vmem:[#allocation13 + $0x20] sm:$0xff]   ;;  %v4467_v45 = vld [vmem:[#allocation15 + $0x28] sm:$0xff]  }
 0x51d   :  { %3134 = vmatprep.subr.bf16.mxu0 %v4435_v34  ;;  %3175 = vmatprep.subr.bf16.mxu1 %v4438_v51  ;;  %v4468_v34 = vld [vmem:[#allocation13 + $0x28] sm:$0xff]   ;;  %v4469_v51 = vld [vmem:[#allocation15 + $0x30] sm:$0xff]  }
 0x520   :  { %3135 = vmatpush1.bf16.msra.mxu0 %v4433_v19  ;;  %3176 = vmatpush1.bf16.msra.mxu1 %v4436_v22  ;;  %v4470_v19 = vld [vmem:[#allocation13 + $0x30] sm:$0xff]   ;;  %v4471_v22 = vld [vmem:[#allocation15 + $0x38] sm:$0xff]  }
 0x521   :  { %3136 = vmatprep.subr.bf16.mxu0 %v4441_v12  ;;  %3177 = vmatprep.subr.bf16.mxu1 %v4444_v23  ;;  %v4472_v12 = vld [vmem:[#allocation13 + $0x38] sm:$0xff]   ;;  %v3247_v23 = vpack.c.bf16 %v5135_v24, %v5135_v24  ;;  %v5316_v24 = vld [vmem:[#allocation29_spill] sm:$0xff] }
 0x524   :  { %3137 = vmatpush1.bf16.msra.mxu0 %v4439_v48  ;;  %3178 = vmatpush1.bf16.msra.mxu1 %v4442_v31  ;;  %v4473_v48 = vld [vmem:[#allocation3] sm:$0xff]   ;;  %v4474_v31 = vld [vmem:[#allocation3 + $0x8] sm:$0xff]  }
 0x525   :  { %3138 = vmatprep.subr.bf16.mxu0 %v4447_v35  ;;  %3179 = vmatprep.subr.bf16.mxu1 %v4450_v25 }
 0x528   :  { %3139 = vmatpush1.bf16.msra.mxu0 %v4445_v33  ;;  %3180 = vmatpush1.bf16.msra.mxu1 %v4448_v47  ;;  %v5314_v33 = vld [vmem:[#allocation27_spill] sm:$0xff] }
 0x529   :  { %3140 = vmatprep.subr.bf16.mxu0 %v4453_v37  ;;  %3181 = vmatprep.subr.bf16.mxu1 %v4456_v21  ;;  %v5315_v37 = vld [vmem:[#allocation28_spill] sm:$0xff] }
 0x52c   :  { %3141 = vmatpush1.bf16.msra.mxu0 %v4451_v32  ;;  %3182 = vmatpush1.bf16.msra.mxu1 %v4454_v52 }
 0x52d   :  { %4004 = vmatprep.subr.bf16.mxu0 %v4770_v53  ;;  %4024 = vmatprep.subr.bf16.mxu1 %v4770_v53 }
 0x5e1   :  { %v2842_v54 = vpop.f32.mrb[28].mxu0  ;;  %v2883_v55 = vpop.f32.mrb[28].mxu1 }
 0x5e2   :  { %v2890_v57 = vadd.f32 %v5310_v56, %v2842_v54  ;;  %v2892_v59 = vadd.f32 %v5311_v58, %v2883_v55  ;;  %v2844_v60 = vpop.f32.mrb[29].mxu0  ;;  %v2885_v61 = vpop.f32.mrb[29].mxu1  ;;  %v5317_v55 = vld [vmem:[#allocation30_spill] sm:$0xff] }
 0x5e3   :  { %v2891_v63 = vadd.f32 %v5312_v62, %v2844_v60  ;;  %v2893_v1 = vadd.f32 %v5313_v0, %v2885_v61  ;;  %v2846_v2 = vpop.f32.mrb[30].mxu0  ;;  %v2887_v3 = vpop.f32.mrb[30].mxu1 }
 0x5e4   :  { %v3865_v4 = vmul.f32 -1.442695, %v2890_v57  ;;  %v2847_v5 = vpop.f32.mrb[31].mxu0  ;;  %v2888_v6 = vpop.f32.mrb[31].mxu1 }
 0x5e5   :  { %v3866_v7 = vmul.f32 -1.442695, %v2891_v63  ;;  %v3867_v8 = vmul.f32 -1.442695, %v2893_v1 }
 0x5e6   :  { %4540 = vpow2.f32 %v3865_v4 }
 0x5e7   :  { %4542 = vpow2.f32 %v3866_v7 }
 0x5e8   :  { %4544 = vpow2.f32 %v3867_v8 }
 0x5e9   :  { %4546 = vtanh.f32 %v2892_v59 }
 0x5f0   :  { %v4541_v9 = vpop.eup %4540 }
 0x5f1   :  { %v4543_v10 = vpop.eup %4542  ;;  %v2902_v11 = vadd.f32 1.0, %v4541_v9 }
 0x5f2   :  { %v2909_v13 = vadd.f32 1.0, %v4543_v10  ;;  %v4545_v14 = vpop.eup %4544  ;;  %v3903_v10 = vld [vmem:[%s5295_s9] ss:$0 sm:$0xff]  ;;  %s4772_s9 = smov [#allocation16]  }
 0x5f3   :  { %4548 = vrcp.f32 %v2902_v11  ;;  %v4547_v15 = vpop.eup %4546  ;;  %v2918_v30 = vadd.f32 1.0, %v4545_v14  ;;  %s3533_s20 = sshll.u32 %s4772_s9, 4  ;;  %s3534_s20 = int_to_ptr.vmem [resolvable:$true] %s3533_s20 }
 0x5f4   :  { %4550 = vrcp.f32 %v2909_v13  ;;  %s4726_s22 = scalar_lea.vmem %s3534_s20, 384  ;;  %p4731_p1 = scmp.lt.s32.totalorder %s3534_s20, %s3534_s20 }
 0x5f5   :  { %4552 = vrcp.f32 %v2918_v30  ;;  %p4727_p0 = scmp.ne.s32.totalorder %s3534_s20, %s4726_s22  ;;  %p4732_p2 = scmp.lt.s32.totalorder %s4726_s22, %s4726_s22 }
 0x5f7   :  { %p4733_p3 = por %p4732_p2, %p4731_p1 }
 0x5f9   :  { %p4734_p4 = pnand %p4733_p3, %p4727_p0 }
 0x5fd   :  { %v4549_v17 = vpop.eup %4548 }
 0x5fe   :  { %v4551_v18 = vpop.eup %4550  ;;  %v2922_v28 = vmul.f32 %v4549_v17, %v4547_v15 }
 0x5ff   :  { %v2921_v36 = vmul.f32 %v4551_v18, %v5224_v16  ;;  %v4553_v29 = vpop.eup %4552  ;;  %v4461_v16 = vld [vmem:[#allocation15 + $0x10] sm:$0xff]  }
 0x601   :  { %v5236_v20 = vadd.f32 %v2922_v28, %v2921_v36 }
 0x603   :  { %4554 = vtanh.f32 %v5236_v20 }
 0x60d   :  { %v4555_v38 = vpop.eup %4554 }
 0x60e   :  { %v2925_v43 = vmul.f32 %v4555_v38, %v4553_v29 }
 0x610   :  { %v2926_v46 = vpack.c.bf16 %v2925_v43, %v2925_v43 }
 0x612   :  { %2928 = vst [vmem:[#allocation3 + $0x10] sm:$0xf] %v2926_v46  ;;  %3159 = vmatmul.mubr.bf16.vlgmr.msra.gmra.mrb[32].mxu0 %v2926_v46  ;;  %3200 = vmatmul.mubr.bf16.vlgmr.msra.gmra.mrb[32].mxu1 %v2926_v46 }
 0x613   :  { %4005 = vmatpush3.bf16.msra.mxu0 %v4457_v42  ;;  %4025 = vmatpush3.bf16.msra.mxu1 %v4458_v27 }
 0x614   :  { %4006 = vmatprep.subr.bf16.mxu0 %v4770_v53  ;;  %4026 = vmatprep.subr.bf16.mxu1 %v4770_v53 }
 0x615   :  { %4020 = vmatprep.mubr.msk.bf16.mxu0 %vm4771_vm0, %v4770_v53  ;;  %4040 = vmatprep.mubr.msk.bf16.mxu1 %vm4771_vm0, %v4770_v53 }
 0x617   :  { %4007 = vmatpush3.bf16.msra.mxu0 %v4459_v39  ;;  %4027 = vmatpush3.bf16.msra.mxu1 %v4460_v40 }
 0x618   :  { %4008 = vmatprep.subr.bf16.mxu0 %v4770_v53  ;;  %4028 = vmatprep.subr.bf16.mxu1 %v4770_v53 }
 0x61b   :  { %4009 = vmatpush3.bf16.msra.mxu0 %v4461_v16  ;;  %4029 = vmatpush3.bf16.msra.mxu1 %v4462_v44 }
 0x61c   :  { %4010 = vmatprep.subr.bf16.mxu0 %v4770_v53  ;;  %4030 = vmatprep.subr.bf16.mxu1 %v4770_v53 }
 0x61f   :  { %4011 = vmatpush3.bf16.msra.mxu0 %v4463_v26  ;;  %4031 = vmatpush3.bf16.msra.mxu1 %v4464_v41 }
 0x620   :  { %4012 = vmatprep.subr.bf16.mxu0 %v4770_v53  ;;  %4032 = vmatprep.subr.bf16.mxu1 %v4770_v53 }
 0x623   :  { %4013 = vmatpush3.bf16.msra.mxu0 %v4465_v49  ;;  %4033 = vmatpush3.bf16.msra.mxu1 %v4466_v50 }
 0x624   :  { %4014 = vmatprep.subr.bf16.mxu0 %v4770_v53  ;;  %4034 = vmatprep.subr.bf16.mxu1 %v4770_v53 }
 0x627   :  { %4015 = vmatpush3.bf16.msra.mxu0 %v4467_v45  ;;  %4035 = vmatpush3.bf16.msra.mxu1 %v4468_v34 }
 0x628   :  { %4016 = vmatprep.subr.bf16.mxu0 %v4770_v53  ;;  %4036 = vmatprep.subr.bf16.mxu1 %v4770_v53 }
 0x62b   :  { %4017 = vmatpush3.bf16.msra.mxu0 %v4469_v51  ;;  %4037 = vmatpush3.bf16.msra.mxu1 %v4470_v19 }
 0x62c   :  { %4018 = vmatprep.subr.bf16.mxu0 %v4770_v53  ;;  %4038 = vmatprep.subr.bf16.mxu1 %v4770_v53 }
 0x62f   :  { %4019 = vmatpush3.bf16.msra.mxu0 %v4471_v22  ;;  %4039 = vmatpush3.bf16.msra.mxu1 %v4472_v12 }
 0x632   :  { %4021 = vmatmul.mubr.bf16.vlgmr.msra.gmra.mrb[36].mxu0 %v3247_v23  ;;  %4041 = vmatmul.mubr.bf16.vlgmr.msra.gmra.mrb[36].mxu1 %v4473_v48 }
 0x633   :  { %4044 = vmatprep.mubr.msk.bf16.mxu1 %vm4771_vm0, %v4770_v53 }
 0x63a   :  { %4045 = vmatmul.mubr.bf16.gmra.mrb[40].mxu1 %v4474_v31 }
 0x63b   :  { %4048 = vmatprep.mubr.msk.bf16.mxu1 %vm4771_vm0, %v4770_v53 }
 0x6e5   :  { %v3160_v35 = vpop.f32.mrb[32].mxu0  ;;  %v3201_v25 = vpop.f32.mrb[32].mxu1 }
 0x6e6   :  { %v3208_v47 = vadd.f32 %v5314_v33, %v3160_v35  ;;  %v3210_v21 = vadd.f32 %v5315_v37, %v3201_v25  ;;  %v3162_v32 = vpop.f32.mrb[33].mxu0  ;;  %v3203_v52 = vpop.f32.mrb[33].mxu1 }
 0x6e7   :  { %v3209_v54 = vadd.f32 %v5316_v24, %v3162_v32  ;;  %v3211_v56 = vadd.f32 %v5317_v55, %v3203_v52  ;;  %v3164_v57 = vpop.f32.mrb[34].mxu0  ;;  %v3205_v58 = vpop.f32.mrb[34].mxu1 }
 0x6e8   :  { %v3900_v59 = vmul.f32 -1.442695, %v3208_v47  ;;  %v3165_v60 = vpop.f32.mrb[35].mxu0  ;;  %v3206_v61 = vpop.f32.mrb[35].mxu1 }
 0x6e9   :  { %v3901_v62 = vmul.f32 -1.442695, %v3209_v54  ;;  %v3902_v53 = vmul.f32 -1.442695, %v3211_v56 }
 0x6ea   :  { %4556 = vpow2.f32 %v3900_v59 }
 0x6eb   :  { %4558 = vpow2.f32 %v3901_v62 }
 0x6ec   :  { %4560 = vpow2.f32 %v3902_v53 }
 0x6ed   :  { %4562 = vtanh.f32 %v3210_v21 }
 0x6f4   :  { %v4557_v63 = vpop.eup %4556 }
 0x6f5   :  { %v4559_v0 = vpop.eup %4558  ;;  %v3220_v1 = vadd.f32 1.0, %v4557_v63 }
 0x6f6   :  { %v3227_v2 = vadd.f32 1.0, %v4559_v0  ;;  %v4561_v3 = vpop.eup %4560 }
 0x6f7   :  { %4564 = vrcp.f32 %v3220_v1  ;;  %v4563_v4 = vpop.eup %4562  ;;  %v3236_v8 = vadd.f32 1.0, %v4561_v3 }
 0x6f8   :  { %4566 = vrcp.f32 %v3227_v2 }
 0x6f9   :  { %4568 = vrcp.f32 %v3236_v8 }
 0x701   :  { %v4565_v5 = vpop.eup %4564 }
 0x702   :  { %v4567_v6 = vpop.eup %4566  ;;  %v3240_v7 = vmul.f32 %v4565_v5, %v4563_v4 }
 0x703   :  { %v3239_v9 = vmul.f32 %v4567_v6, %v5236_v20  ;;  %v4569_v44 = vpop.eup %4568 }
 0x705   :  { %v3241_v11 = vadd.f32 %v3240_v7, %v3239_v9  ;;  %v3353_v13 = vpop.f32.mrb[36].mxu0  ;;  %v3481_v14 = vpop.f32.mrb[36].mxu1 }
 0x706   :  { %v3354_v15 = vadd.f32 %v3903_v10, %v3353_v13  ;;  %v4022_v17 = vpop.f32.mrb[37].mxu0  ;;  %v4042_v18 = vpop.f32.mrb[37].mxu1 }
 0x707   :  { %4570 = vtanh.f32 %v3241_v11  ;;  %v3356_v28 = vpop.f32.mrb[38].mxu0  ;;  %v3484_v30 = vpop.f32.mrb[38].mxu1 }
 0x708   :  { %v3504_v36 = vadd.f32 %v3481_v14, %v3354_v15  ;;  %v3505_v29 = vadd.f32 %v3484_v30, %v3354_v15  ;;  %v4023_v38 = vpop.f32.mrb[39].mxu0  ;;  %v4043_v43 = vpop.f32.mrb[39].mxu1 }
 0x70a   :  { %v3510_v42 = vmax.f32 %v3504_v36, 0.0  ;;  %v3511_v20 = vmax.f32 %v3505_v29, 0.0 }
 0x70c   :  { %v3926_v27 = vpack.c.bf16 %v3511_v20, %v3510_v42 }
 0x70d   :  { %v3489_v46 = vpop.f32.mrb[40].mxu1 }
 0x70e   :  { %3927 = vst [vmem:[#allocation16] sm:$0xff] %v3926_v27   ;;  %v3506_v39 = vadd.f32 %v3489_v46, %v3354_v15  ;;  %v4046_v40 = vpop.f32.mrb[41].mxu1 }
 0x70f   :  { %v3492_v16 = vpop.f32.mrb[42].mxu1 }
 0x710   :  { %v3507_v26 = vadd.f32 %v3492_v16, %v3354_v15  ;;  %v4047_v41 = vpop.f32.mrb[43].mxu1  ;;  %v3512_v45 = vmax.f32 %v3506_v39, 0.0 }
 0x711   :  { %v4571_v49 = vpop.eup %4570 }
 0x712   :  { %v3243_v50 = vmul.f32 %v4571_v49, %v4569_v44  ;;  %v3513_v34 = vmax.f32 %v3507_v26, 0.0 }
 0x714   :  { %v3244_v51 = vpack.c.bf16 %v3243_v50, %v3243_v50  ;;  %v3931_v19 = vpack.c.bf16 %v3513_v34, %v3512_v45 }
 0x716   :  { %3246 = vst [vmem:[#allocation3 + $0x14] sm:$0xf] %v3244_v51  ;;  %3938 = vst [vmem:[#allocation16 + $0x8] sm:$0xff] %v3931_v19  }
 0x71d   :  { %v4475_v22 = vld [vmem:[#allocation3 + $0x10] sm:$0xff]  }
 0x71e   :  { %4049 = vmatmul.mubr.bf16.gmra.mrb[44].mxu1 %v4475_v22 }
 0x7f1   :  { %v3497_v12 = vpop.f32.mrb[44].mxu1 }
 0x7f2   :  { %v3508_v23 = vadd.f32 %v3497_v12, %v3354_v15  ;;  %v4050_v48 = vpop.f32.mrb[45].mxu1 }
 0x7f3   :  { %v3500_v31 = vpop.f32.mrb[46].mxu1 }
 0x7f4   :  { %v3509_v35 = vadd.f32 %v3500_v31, %v3354_v15  ;;  %v4051_v25 = vpop.f32.mrb[47].mxu1  ;;  %v3514_v33 = vmax.f32 %v3508_v23, 0.0 }
 0x7f6   :  { %v3515_v47 = vmax.f32 %v3509_v35, 0.0 }
 0x7f8   :  { %v3936_v37 = vpack.c.bf16 %v3515_v47, %v3514_v33 }
 0x7fa   :  { %3939 = vst [vmem:[#allocation16 + $0x10] sm:$0xff] %v3936_v37  }
 0x7fb   :  { %4737 = shalt.err (!%p4734_p4)
}
 0x7fc   :  { %s4738_s19 = scalar_lea.hbm %s5296_s10, 384 }
 0x7fd   :  { %p4739_p5 = scmp.ne.s32.totalorder %s5296_s10, %s4738_s19  ;;  %p4742_p6 = scmp.lt.u32.totalorder %s4738_s19, %s5296_s10 }
 0x7ff   :  { %p4744_p7 = pnand %p4742_p6, %p4739_p5 }
 0x801   :  { %4747 = shalt.err (!%p4744_p7)
}
 0x802   :  { %3539 = dma.vmem_to_hbm [thread:$0]  %s3534_s20, 384, %s5296_s10, [#allocation6], %s4764_s26, %s4764_s26, %s4765_s30  }
 0x803   :  { %4756 = dma.done.wait [#allocation6], 384  }
 0x804   :  { %4757 = vsyncadd [#allocation6], 4294966912 }
 0x805   :  { %3543 = vsyncpa [#allocation5], 1 }
 0x806   :  { %3544 = vsyncpa [#allocation8], 1 }
 0x807   :  { %3545 = vsyncpa [#allocation11], 1 }
 0x808   :  { %3546 = vsyncpa [#allocation14], 1 }
 0x809   :  { %3547 = vsyncpa [#allocation6], 1 }

</bundles_post_ra>
